<compile_context>
chip_gen: v6e
topology: v6e:2x2x1
jax: 0.10.0
libtpu: 0.0.40
codegen_flags: <defaults>
</compile_context>

<pallas_src>
import jax
import jax.numpy as jnp
from jax import lax
from jax.experimental import pallas as pl
from jax.experimental.pallas import tpu as pltpu

# Module hyper-params (small, consistent with Attention(dim, dim_head, heads, scale))
DIM = 32
DIM_HEAD = 16
HEADS = 4
SCALE = 8.0
INNER = DIM_HEAD * HEADS          # 64
B = 2
N = 8
LN_EPS = 1e-5
L2_EPS = 1e-12

_HIGHEST = lax.Precision.HIGHEST  # full-f32 MXU passes (kernel and reference agree)


def attention_kernel(x_ref, gamma_ref, wqkv_ref, scale_ref, nkrow_ref, nv_ref,
                     bdqk_ref, bdhead_ref, maskkv_ref, bmask_ref, wout_ref, o_ref):
    """One batch-tile per grid step.  x_ref is (rows, DIM) with rows = batches*N so
    LayerNorm, the fused QKV projection, l2norm, softmax and the output projection all
    run fully vectorized across batches and heads (7 MXU pushes total)."""
    rows = x_ref.shape[0]                                      # static (block shape)

    x = x_ref[...]                                             # (rows, DIM)

    # --- LayerNorm (beta buffer is zeros) ---
    mu = jnp.mean(x, axis=-1, keepdims=True)
    var = jnp.mean((x - mu) ** 2, axis=-1, keepdims=True)
    xn = (x - mu) * lax.rsqrt(var + LN_EPS) * gamma_ref[...]   # gamma: (1, DIM)

    # --- fused Q/K/V projection: 1 push, (rows, DIM) @ (DIM, 3*INNER) ---
    qkv = jnp.dot(xn, wqkv_ref[...],
                  preferred_element_type=jnp.float32, precision=_HIGHEST)
    qk = qkv[:, :2 * INNER]                                    # (rows, 2*INNER) q|k slab
    v = qkv[:, 2 * INNER:]                                     # (rows, INNER)

    # --- l2norm of q, k AND the null key in one vectorized pass ---
    # Append the (1, 2*INNER) null-key row (nk tiled into both halves) so its k-half is
    # normalized+k_scaled together with the real keys.  Per-head sum of squares is one
    # (rows+1, 128) @ (128, 128) matmul against a block-diagonal ones matrix, which
    # leaves the per-head norm replicated across that head's 16 columns.
    qk_ext = jnp.concatenate([qk, nkrow_ref[...]], axis=0)     # (rows+1, 2*INNER)
    ss = jnp.dot(qk_ext * qk_ext, bdqk_ref[...],
                 preferred_element_type=jnp.float32, precision=_HIGHEST)
    # F.normalize(t, dim=-1) == t / max(||t||, eps); rsqrt form differs only for
    # (near-)zero-norm rows.  scale_ref = [q_scale*SCALE | k_scale] tiled per head,
    # so SCALE is folded in here and never touched again.
    qk_n = qk_ext * lax.rsqrt(jnp.maximum(ss, L2_EPS * L2_EPS)) * scale_ref[...]

    q_n = qk_n[:rows, :INNER]                                  # (rows, INNER)
    k_n = qk_n[:rows, INNER:]                                  # (rows, INNER)
    nk_n = qk_n[rows:, INNER:]                                 # (1, INNER)  null key

    # --- block-diagonal key / value matrices: all heads in ONE sim / PV matmul ---
    # mask_kv[h'*rows + j, h*d_head + d] = [h'==h]; tiling k/v along sublanes and
    # masking yields diag(k_1, ..., k_H) / diag(v_1, ..., v_H) without per-head loops.
    mask_kv = maskkv_ref[...]                                  # (HEADS*rows, INNER)
    k_blocks = jnp.tile(k_n, (HEADS, 1)) * mask_kv
    v_blocks = jnp.tile(v, (HEADS, 1)) * mask_kv

    # sim[i, h*rows + j] = <q_h[i], k_h[j]>   (single NT dot_general, one rearrange
    # of the whole key matrix instead of 8 per-head transposes)
    sim = lax.dot_general(q_n, k_blocks, (((1,), (1,)), ((), ())),
                          preferred_element_type=jnp.float32, precision=_HIGHEST)
    # Null-key similarity, replicated across each head's column block so it broadcasts
    # against nv and the denominator without any lane regrouping.
    sim0 = jnp.dot(q_n * nk_n, bdhead_ref[...],
                   preferred_element_type=jnp.float32, precision=_HIGHEST)

    # No max-subtraction: q, k are l2-normalized so |sim| <= SCALE*max|q_scale*k_scale|
    # (~13 here) and exp stays far from f32 overflow.  Only valid while the learnable
    # scales stay O(1).
    p = jnp.exp(sim) * bmask_ref[...]      # post-exp block-diag batch mask (exact)
    p0 = jnp.exp(sim0)                     # (rows, INNER), replicated per head block

    den = jnp.dot(p, mask_kv,
                  preferred_element_type=jnp.float32, precision=_HIGHEST) + p0
    num = (jnp.dot(p, v_blocks,
                   preferred_element_type=jnp.float32, precision=_HIGHEST)
           + p0 * nv_ref[...])
    out_slab = num / den                                        # (rows, INNER) = (h d)

    # --- single output projection: 1 push instead of 8 per-(batch,head) dots ---
    o_ref[...] = jnp.dot(out_slab, wout_ref[...],
                         preferred_element_type=jnp.float32, precision=_HIGHEST)


def _default_batch_tiles(batch, seq):
    """Megacore (v7x, 2 TCs) only pays off once per-core work amortizes the ~0.35us
    per-step overhead and the duplicated weight DMAs; at B*N = 16 rows it never does,
    so default to a single grid step and only split large batches on v7x."""
    if batch % 2 != 0 or batch * seq < 2048:
        return 1
    try:
        if "v7" in jax.devices()[0].device_kind.lower():
            return 2
    except Exception:
        pass
    return 1


def ein_attention(x, gamma, wq, wkv, nk, nv, q_scale, k_scale, wout, *,
                  batch_tiles=None):
    Bx, Nx, Dx = x.shape
    assert Nx == N and Dx == DIM
    if batch_tiles is None:
        batch_tiles = _default_batch_tiles(Bx, Nx)
    assert Bx % batch_tiles == 0
    batches_per_tile = Bx // batch_tiles
    rows = batches_per_tile * Nx

    f32 = jnp.float32

    # --- one-time parameter / constant packing in the wrapper (layout only) ---
    wqkv = jnp.concatenate([wq, wkv], axis=1)                  # (DIM, 3*INNER)
    scale_row = jnp.concatenate([jnp.tile(q_scale * SCALE, (1, HEADS)),
                                 jnp.tile(k_scale, (1, HEADS))], axis=1)   # (1, 2*INNER)
    nk_flat = nk.reshape(1, INNER)
    nk_row = jnp.tile(nk_flat, (1, 2))                         # (1, 2*INNER)
    nv_flat = nv.reshape(1, INNER)                             # (1, INNER)

    # Block-diagonal constants (tiny, f32):
    #   bd_qk : per-head sum-of-squares broadcaster over the [q|k] slab
    #   bd_head: per-head broadcaster over a q-width slab (null-key sim replication)
    #   mask_kv: block-diag mask / per-head row-sum reducer for the key axis
    #   bmask : same-batch mask (cross-batch attention removed post-exp)
    bd_qk = jnp.kron(jnp.eye(2 * HEADS, dtype=f32), jnp.ones((DIM_HEAD, DIM_HEAD), f32))
    bd_head = jnp.kron(jnp.eye(HEADS, dtype=f32), jnp.ones((DIM_HEAD, DIM_HEAD), f32))
    mask_kv = jnp.kron(jnp.eye(HEADS, dtype=f32), jnp.ones((rows, DIM_HEAD), f32))
    same_batch = jnp.kron(jnp.eye(batches_per_tile, dtype=f32), jnp.ones((Nx, Nx), f32))
    bmask = jnp.tile(same_batch, (1, HEADS))                   # (rows, HEADS*rows)

    x_flat = x.reshape(Bx * Nx, Dx)                            # fold batch into rows

    out_flat = pl.pallas_call(
        attention_kernel,
        out_shape=jax.ShapeDtypeStruct((Bx * Nx, Dx), jnp.float32),
        grid=(batch_tiles,),
        in_specs=[
            pl.BlockSpec((rows, Dx), lambda t: (t, 0)),                    # x rows
            pl.BlockSpec((1, DIM), lambda t: (0, 0)),                      # gamma
            pl.BlockSpec((DIM, 3 * INNER), lambda t: (0, 0)),              # fused Wqkv
            pl.BlockSpec((1, 2 * INNER), lambda t: (0, 0)),                # [qs*SCALE|ks]
            pl.BlockSpec((1, 2 * INNER), lambda t: (0, 0)),                # null_k row
            pl.BlockSpec((1, INNER), lambda t: (0, 0)),                    # null_v flat
            pl.BlockSpec((2 * INNER, 2 * INNER), lambda t: (0, 0)),        # bd_qk
            pl.BlockSpec((INNER, INNER), lambda t: (0, 0)),                # bd_head
            pl.BlockSpec((HEADS * rows, INNER), lambda t: (0, 0)),         # mask_kv
            pl.BlockSpec((rows, HEADS * rows), lambda t: (0, 0)),          # batch mask
            pl.BlockSpec((INNER, DIM), lambda t: (0, 0)),                  # Wout
        ],
        out_specs=pl.BlockSpec((rows, Dx), lambda t: (t, 0)),
        compiler_params=pltpu.CompilerParams(dimension_semantics=("parallel",)),
    )(x_flat, gamma, wqkv, scale_row, nk_row, nv_flat,
      bd_qk, bd_head, mask_kv, bmask, wout)

    return out_flat.reshape(Bx, Nx, Dx)


def reference(x, gamma, wq, wkv, nk, nv, q_scale, k_scale, wout):
    """Pure-JAX reproduction of the PyTorch forward (for the correctness check)."""
    mu = jnp.mean(x, axis=-1, keepdims=True)
    var = jnp.mean((x - mu) ** 2, axis=-1, keepdims=True)
    xn = (x - mu) / jnp.sqrt(var + LN_EPS) * gamma[0]

    q = jnp.dot(xn, wq, precision=_HIGHEST)
    kv = jnp.dot(xn, wkv, precision=_HIGHEST)
    k, v = kv[..., :INNER], kv[..., INNER:]

    def split_heads(t):
        b, n, _ = t.shape
        return t.reshape(b, n, HEADS, DIM_HEAD).transpose(0, 2, 1, 3)   # (b, h, n, d)

    q, k, v = map(split_heads, (q, k, v))
    nk_b = jnp.broadcast_to(nk[None, :, None, :], (x.shape[0], HEADS, 1, DIM_HEAD))
    nv_b = jnp.broadcast_to(nv[None, :, None, :], (x.shape[0], HEADS, 1, DIM_HEAD))
    k = jnp.concatenate([nk_b, k], axis=-2)
    v = jnp.concatenate([nv_b, v], axis=-2)

    def l2norm(t):
        return t / jnp.maximum(jnp.sqrt(jnp.sum(t * t, axis=-1, keepdims=True)), L2_EPS)

    q = l2norm(q) * q_scale[0]
    k = l2norm(k) * k_scale[0]
    sim = jnp.einsum('bhid,bhjd->bhij', q, k, precision=_HIGHEST) * SCALE
    attn = jax.nn.softmax(sim, axis=-1)
    out = jnp.einsum('bhij,bhjd->bhid', attn, v, precision=_HIGHEST)
    out = out.transpose(0, 2, 1, 3).reshape(x.shape[0], x.shape[1], INNER)
    return jnp.dot(out, wout, precision=_HIGHEST)


if __name__ == "__main__":
    key = jax.random.PRNGKey(0)
    kx, kq, kkv, knull, kout, kg, kqs, kks = jax.random.split(key, 8)

    x = jax.random.normal(kx, (B, N, DIM), dtype=jnp.float32)

    # Learnable params: initialized near the module defaults (ones) but perturbed so
    # every code path is actually exercised by the check.
    gamma = 1.0 + 0.1 * jax.random.normal(kg, (1, DIM), dtype=jnp.float32)
    wq = 0.02 * jax.random.normal(kq, (DIM, INNER), dtype=jnp.float32)
    wkv = 0.02 * jax.random.normal(kkv, (DIM, 2 * INNER), dtype=jnp.float32)
    null_kv = jax.random.normal(knull, (2, HEADS, DIM_HEAD), dtype=jnp.float32)
    nk, nv = null_kv[0], null_kv[1]                                    # (HEADS, DIM_HEAD)
    q_scale = 1.0 + 0.1 * jax.random.normal(kqs, (1, DIM_HEAD), dtype=jnp.float32)
    k_scale = 1.0 + 0.1 * jax.random.normal(kks, (1, DIM_HEAD), dtype=jnp.float32)
    wout = 0.02 * jax.random.normal(kout, (INNER, DIM), dtype=jnp.float32)

    out = ein_attention(x, gamma, wq, wkv, nk, nv, q_scale, k_scale, wout)
    out = jax.block_until_ready(out)

    ref = reference(x, gamma, wq, wkv, nk, nv, q_scale, k_scale, wout)
    assert out.shape == (B, N, DIM)
    max_err = jnp.max(jnp.abs(out - ref))
    assert jnp.allclose(out, ref, rtol=2e-3, atol=1e-4), \
        f"mismatch vs pure-JAX reference (max abs err {max_err})"

    print("KERNEL_OK")
</pallas_src>

<mosaic_0001>
module attributes {stable_mosaic.version = 11 : i64} {
  func.func @attention_kernel(%arg0: i32, %arg1: memref<16x32xf32, #tpu.memory_space<vmem>>, %arg2: memref<1x32xf32, #tpu.memory_space<vmem>>, %arg3: memref<32x192xf32, #tpu.memory_space<vmem>>, %arg4: memref<1x128xf32, #tpu.memory_space<vmem>>, %arg5: memref<1x128xf32, #tpu.memory_space<vmem>>, %arg6: memref<1x64xf32, #tpu.memory_space<vmem>>, %arg7: memref<128x128xf32, #tpu.memory_space<vmem>>, %arg8: memref<64x64xf32, #tpu.memory_space<vmem>>, %arg9: memref<64x64xf32, #tpu.memory_space<vmem>>, %arg10: memref<16x64xf32, #tpu.memory_space<vmem>>, %arg11: memref<64x32xf32, #tpu.memory_space<vmem>>, %arg12: memref<16x32xf32, #tpu.memory_space<vmem>>) attributes {dimension_semantics = [#tpu.dimension_semantics<parallel>], iteration_bounds = array<i64: 1>, scalar_prefetch = 0 : i64, scratch_operands = 0 : i64, tpu.core_type = #tpu.core_type<tc>, window_params = [{transform_indices = @transform_0, window_bounds = array<i64: 16, 32>}, {pipeline_mode = #tpu.pipeline_mode<synchronous>, transform_indices = @transform_1, window_bounds = array<i64: 1, 32>}, {pipeline_mode = #tpu.pipeline_mode<synchronous>, transform_indices = @transform_2, window_bounds = array<i64: 32, 192>}, {pipeline_mode = #tpu.pipeline_mode<synchronous>, transform_indices = @transform_3, window_bounds = array<i64: 1, 128>}, {pipeline_mode = #tpu.pipeline_mode<synchronous>, transform_indices = @transform_4, window_bounds = array<i64: 1, 128>}, {pipeline_mode = #tpu.pipeline_mode<synchronous>, transform_indices = @transform_5, window_bounds = array<i64: 1, 64>}, {pipeline_mode = #tpu.pipeline_mode<synchronous>, transform_indices = @transform_6, window_bounds = array<i64: 128, 128>}, {pipeline_mode = #tpu.pipeline_mode<synchronous>, transform_indices = @transform_7, window_bounds = array<i64: 64, 64>}, {pipeline_mode = #tpu.pipeline_mode<synchronous>, transform_indices = @transform_8, window_bounds = array<i64: 64, 64>}, {pipeline_mode = #tpu.pipeline_mode<synchronous>, transform_indices = @transform_9, window_bounds = array<i64: 16, 64>}, {pipeline_mode = #tpu.pipeline_mode<synchronous>, transform_indices = @transform_10, window_bounds = array<i64: 64, 32>}, {transform_indices = @transform_11, window_bounds = array<i64: 16, 32>}]} {
    %c0 = arith.constant 0 : index
    %c0_0 = arith.constant 0 : index
    %0 = vector.load %arg1[%c0, %c0_0] : memref<16x32xf32, #tpu.memory_space<vmem>>, vector<16x32xf32>
    %cst = arith.constant dense<0.000000e+00> : vector<16xf32>
    %1 = vector.multi_reduction <add>, %0, %cst [1] : vector<16x32xf32> to vector<16xf32>
    %2 = vector.shape_cast %1 : vector<16xf32> to vector<16x1xf32>
    %cst_1 = arith.constant 3.200000e+01 : f32
    %3 = vector.broadcast %cst_1 : f32 to vector<16x1xf32>
    %4 = arith.divf %2, %3 : vector<16x1xf32>
    %5 = vector.broadcast %4 : vector<16x1xf32> to vector<16x32xf32>
    %6 = arith.subf %0, %5 : vector<16x32xf32>
    %7 = arith.mulf %6, %6 : vector<16x32xf32>
    %cst_2 = arith.constant dense<0.000000e+00> : vector<16xf32>
    %8 = vector.multi_reduction <add>, %7, %cst_2 [1] : vector<16x32xf32> to vector<16xf32>
    %9 = vector.shape_cast %8 : vector<16xf32> to vector<16x1xf32>
    %cst_3 = arith.constant 3.200000e+01 : f32
    %10 = vector.broadcast %cst_3 : f32 to vector<16x1xf32>
    %11 = arith.divf %9, %10 : vector<16x1xf32>
    %12 = vector.broadcast %4 : vector<16x1xf32> to vector<16x32xf32>
    %13 = arith.subf %0, %12 : vector<16x32xf32>
    %cst_4 = arith.constant 9.99999974E-6 : f32
    %14 = vector.broadcast %cst_4 : f32 to vector<16x1xf32>
    %15 = arith.addf %11, %14 : vector<16x1xf32>
    %16 = math.rsqrt %15 : vector<16x1xf32>
    %17 = vector.broadcast %16 : vector<16x1xf32> to vector<16x32xf32>
    %18 = arith.mulf %13, %17 : vector<16x32xf32>
    %c0_5 = arith.constant 0 : index
    %c0_6 = arith.constant 0 : index
    %19 = vector.load %arg2[%c0_5, %c0_6] : memref<1x32xf32, #tpu.memory_space<vmem>>, vector<1x32xf32>
    %20 = vector.broadcast %19 : vector<1x32xf32> to vector<16x32xf32>
    %21 = arith.mulf %18, %20 : vector<16x32xf32>
    %c0_7 = arith.constant 0 : index
    %c0_8 = arith.constant 0 : index
    %22 = vector.load %arg3[%c0_7, %c0_8] : memref<32x192xf32, #tpu.memory_space<vmem>>, vector<32x192xf32>
    %cst_9 = arith.constant dense<0.000000e+00> : vector<16x192xf32>
    %23 = tpu.matmul %21, %22, %cst_9 {dimension_numbers = #tpu.dot_dimension_numbers<[1], [0], [0], [1], [0, 0, 1, 1], [], []>, precision = #tpu.contract_precision<fp32>} : vector<16x32xf32>, vector<32x192xf32>, vector<16x192xf32> -> vector<16x192xf32>
    %24 = vector.extract_strided_slice %23 {offsets = [0, 0], sizes = [16, 128], strides = [1, 1]} : vector<16x192xf32> to vector<16x128xf32>
    %25 = vector.extract_strided_slice %23 {offsets = [0, 128], sizes = [16, 64], strides = [1, 1]} : vector<16x192xf32> to vector<16x64xf32>
    %c0_10 = arith.constant 0 : index
    %c0_11 = arith.constant 0 : index
    %26 = vector.load %arg5[%c0_10, %c0_11] : memref<1x128xf32, #tpu.memory_space<vmem>>, vector<1x128xf32>
    %27 = tpu.concatenate %24, %26 in 0 : vector<16x128xf32>, vector<1x128xf32> -> vector<17x128xf32>
    %28 = arith.mulf %27, %27 : vector<17x128xf32>
    %c0_12 = arith.constant 0 : index
    %c0_13 = arith.constant 0 : index
    %29 = vector.load %arg7[%c0_12, %c0_13] : memref<128x128xf32, #tpu.memory_space<vmem>>, vector<128x128xf32>
    %cst_14 = arith.constant dense<0.000000e+00> : vector<17x128xf32>
    %30 = tpu.matmul %28, %29, %cst_14 {dimension_numbers = #tpu.dot_dimension_numbers<[1], [0], [0], [1], [0, 0, 1, 1], [], []>, precision = #tpu.contract_precision<fp32>} : vector<17x128xf32>, vector<128x128xf32>, vector<17x128xf32> -> vector<17x128xf32>
    %cst_15 = arith.constant 1.000000e-24 : f32
    %31 = vector.broadcast %cst_15 : f32 to vector<17x128xf32>
    %32 = arith.maximumf %30, %31 : vector<17x128xf32>
    %33 = math.rsqrt %32 : vector<17x128xf32>
    %34 = arith.mulf %27, %33 : vector<17x128xf32>
    %c0_16 = arith.constant 0 : index
    %c0_17 = arith.constant 0 : index
    %35 = vector.load %arg4[%c0_16, %c0_17] : memref<1x128xf32, #tpu.memory_space<vmem>>, vector<1x128xf32>
    %36 = vector.broadcast %35 : vector<1x128xf32> to vector<17x128xf32>
    %37 = arith.mulf %34, %36 : vector<17x128xf32>
    %38 = vector.extract_strided_slice %37 {offsets = [0, 0], sizes = [16, 64], strides = [1, 1]} : vector<17x128xf32> to vector<16x64xf32>
    %39 = vector.extract_strided_slice %37 {offsets = [0, 64], sizes = [16, 64], strides = [1, 1]} : vector<17x128xf32> to vector<16x64xf32>
    %40 = vector.extract_strided_slice %37 {offsets = [16, 64], sizes = [1, 64], strides = [1, 1]} : vector<17x128xf32> to vector<1x64xf32>
    %c0_18 = arith.constant 0 : index
    %c0_19 = arith.constant 0 : index
    %41 = vector.load %arg9[%c0_18, %c0_19] : memref<64x64xf32, #tpu.memory_space<vmem>>, vector<64x64xf32>
    %42 = tpu.concatenate %39, %39, %39, %39 in 0 : vector<16x64xf32>, vector<16x64xf32>, vector<16x64xf32>, vector<16x64xf32> -> vector<64x64xf32>
    %43 = arith.mulf %42, %41 : vector<64x64xf32>
    %44 = tpu.concatenate %25, %25, %25, %25 in 0 : vector<16x64xf32>, vector<16x64xf32>, vector<16x64xf32>, vector<16x64xf32> -> vector<64x64xf32>
    %45 = arith.mulf %44, %41 : vector<64x64xf32>
    %cst_20 = arith.constant dense<0.000000e+00> : vector<16x64xf32>
    %46 = tpu.matmul %38, %43, %cst_20 {dimension_numbers = #tpu.dot_dimension_numbers<[1], [1], [0], [0], [0, 0, 1, 0], [], []>, precision = #tpu.contract_precision<fp32>} : vector<16x64xf32>, vector<64x64xf32>, vector<16x64xf32> -> vector<16x64xf32>
    %47 = vector.broadcast %40 : vector<1x64xf32> to vector<16x64xf32>
    %48 = arith.mulf %38, %47 : vector<16x64xf32>
    %c0_21 = arith.constant 0 : index
    %c0_22 = arith.constant 0 : index
    %49 = vector.load %arg8[%c0_21, %c0_22] : memref<64x64xf32, #tpu.memory_space<vmem>>, vector<64x64xf32>
    %cst_23 = arith.constant dense<0.000000e+00> : vector<16x64xf32>
    %50 = tpu.matmul %48, %49, %cst_23 {dimension_numbers = #tpu.dot_dimension_numbers<[1], [0], [0], [1], [0, 0, 1, 1], [], []>, precision = #tpu.contract_precision<fp32>} : vector<16x64xf32>, vector<64x64xf32>, vector<16x64xf32> -> vector<16x64xf32>
    %51 = math.exp %46 : vector<16x64xf32>
    %c0_24 = arith.constant 0 : index
    %c0_25 = arith.constant 0 : index
    %52 = vector.load %arg10[%c0_24, %c0_25] : memref<16x64xf32, #tpu.memory_space<vmem>>, vector<16x64xf32>
    %53 = arith.mulf %51, %52 : vector<16x64xf32>
    %54 = math.exp %50 : vector<16x64xf32>
    %cst_26 = arith.constant dense<0.000000e+00> : vector<16x64xf32>
    %55 = tpu.matmul %53, %41, %cst_26 {dimension_numbers = #tpu.dot_dimension_numbers<[1], [0], [0], [1], [0, 0, 1, 1], [], []>, precision = #tpu.contract_precision<fp32>} : vector<16x64xf32>, vector<64x64xf32>, vector<16x64xf32> -> vector<16x64xf32>
    %56 = arith.addf %55, %54 : vector<16x64xf32>
    %cst_27 = arith.constant dense<0.000000e+00> : vector<16x64xf32>
    %57 = tpu.matmul %53, %45, %cst_27 {dimension_numbers = #tpu.dot_dimension_numbers<[1], [0], [0], [1], [0, 0, 1, 1], [], []>, precision = #tpu.contract_precision<fp32>} : vector<16x64xf32>, vector<64x64xf32>, vector<16x64xf32> -> vector<16x64xf32>
    %c0_28 = arith.constant 0 : index
    %c0_29 = arith.constant 0 : index
    %58 = vector.load %arg6[%c0_28, %c0_29] : memref<1x64xf32, #tpu.memory_space<vmem>>, vector<1x64xf32>
    %59 = vector.broadcast %58 : vector<1x64xf32> to vector<16x64xf32>
    %60 = arith.mulf %54, %59 : vector<16x64xf32>
    %61 = arith.addf %57, %60 : vector<16x64xf32>
    %62 = arith.divf %61, %56 : vector<16x64xf32>
    %c0_30 = arith.constant 0 : index
    %c0_31 = arith.constant 0 : index
    %63 = vector.load %arg11[%c0_30, %c0_31] : memref<64x32xf32, #tpu.memory_space<vmem>>, vector<64x32xf32>
    %cst_32 = arith.constant dense<0.000000e+00> : vector<16x32xf32>
    %64 = tpu.matmul %62, %63, %cst_32 {dimension_numbers = #tpu.dot_dimension_numbers<[1], [0], [0], [1], [0, 0, 1, 1], [], []>, precision = #tpu.contract_precision<fp32>} : vector<16x64xf32>, vector<64x32xf32>, vector<16x32xf32> -> vector<16x32xf32>
    %c0_33 = arith.constant 0 : index
    %c0_34 = arith.constant 0 : index
    %65 = vector.load %arg12[%c0_33, %c0_34] : memref<16x32xf32, #tpu.memory_space<vmem>>, vector<16x32xf32>
    tpu.vector_store %arg12[%c0_33, %c0_34], %64 {strides = array<i32>} : memref<16x32xf32, #tpu.memory_space<vmem>>, vector<16x32xf32>,
    return
  }
  func.func @transform_0(%arg0: i32) -> (i32, i32) {
    %c0_i32 = arith.constant 0 : i32
    %c0_i32_0 = arith.constant 0 : i32
    return %arg0, %c0_i32 : i32, i32
  }
  func.func @transform_1(%arg0: i32) -> (i32, i32) {
    %c0_i32 = arith.constant 0 : i32
    %c0_i32_0 = arith.constant 0 : i32
    %c0_i32_1 = arith.constant 0 : i32
    return %c0_i32, %c0_i32_0 : i32, i32
  }
  func.func @transform_2(%arg0: i32) -> (i32, i32) {
    %c0_i32 = arith.constant 0 : i32
    %c0_i32_0 = arith.constant 0 : i32
    %c0_i32_1 = arith.constant 0 : i32
    return %c0_i32, %c0_i32_0 : i32, i32
  }
  func.func @transform_3(%arg0: i32) -> (i32, i32) {
    %c0_i32 = arith.constant 0 : i32
    %c0_i32_0 = arith.constant 0 : i32
    %c0_i32_1 = arith.constant 0 : i32
    return %c0_i32, %c0_i32_0 : i32, i32
  }
  func.func @transform_4(%arg0: i32) -> (i32, i32) {
    %c0_i32 = arith.constant 0 : i32
    %c0_i32_0 = arith.constant 0 : i32
    %c0_i32_1 = arith.constant 0 : i32
    return %c0_i32, %c0_i32_0 : i32, i32
  }
  func.func @transform_5(%arg0: i32) -> (i32, i32) {
    %c0_i32 = arith.constant 0 : i32
    %c0_i32_0 = arith.constant 0 : i32
    %c0_i32_1 = arith.constant 0 : i32
    return %c0_i32, %c0_i32_0 : i32, i32
  }
  func.func @transform_6(%arg0: i32) -> (i32, i32) {
    %c0_i32 = arith.constant 0 : i32
    %c0_i32_0 = arith.constant 0 : i32
    %c0_i32_1 = arith.constant 0 : i32
    return %c0_i32, %c0_i32_0 : i32, i32
  }
  func.func @transform_7(%arg0: i32) -> (i32, i32) {
    %c0_i32 = arith.constant 0 : i32
    %c0_i32_0 = arith.constant 0 : i32
    %c0_i32_1 = arith.constant 0 : i32
    return %c0_i32, %c0_i32_0 : i32, i32
  }
  func.func @transform_8(%arg0: i32) -> (i32, i32) {
    %c0_i32 = arith.constant 0 : i32
    %c0_i32_0 = arith.constant 0 : i32
    %c0_i32_1 = arith.constant 0 : i32
    return %c0_i32, %c0_i32_0 : i32, i32
  }
  func.func @transform_9(%arg0: i32) -> (i32, i32) {
    %c0_i32 = arith.constant 0 : i32
    %c0_i32_0 = arith.constant 0 : i32
    %c0_i32_1 = arith.constant 0 : i32
    return %c0_i32, %c0_i32_0 : i32, i32
  }
  func.func @transform_10(%arg0: i32) -> (i32, i32) {
    %c0_i32 = arith.constant 0 : i32
    %c0_i32_0 = arith.constant 0 : i32
    %c0_i32_1 = arith.constant 0 : i32
    return %c0_i32, %c0_i32_0 : i32, i32
  }
  func.func @transform_11(%arg0: i32) -> (i32, i32) {
    %c0_i32 = arith.constant 0 : i32
    %c0_i32_0 = arith.constant 0 : i32
    return %arg0, %c0_i32 : i32, i32
  }
}

</mosaic_0001>

<bundles_post_ra>
// kernel: tpu_custom_call.1
= control target key start
LH: loop header
LB: loop body
LE: loop exit
PB: predicated region body
PF: predicated region fallthrough
CT: control target
= control target key end

     0   :  { %16 = vsyncpa [#allocation3], 0  ;;  %s7687_s0 = inlined_call_operand.vmem [shape: f32[16,32], index: 0, kind: input, shape index: {}]   ;;  %s7688_s1 = inlined_call_operand.vmem [shape: f32[1,32], index: 1, kind: input, shape index: {}]   ;;  %s7689_s2 = inlined_call_operand.vmem [shape: f32[32,192], index: 2, kind: input, shape index: {}]   ;;  %s7690_s3 = inlined_call_operand.vmem [shape: f32[1,128], index: 3, kind: input, shape index: {}]   ;;  %s7691_s4 = inlined_call_operand.vmem [shape: f32[1,128], index: 4, kind: input, shape index: {}]   ;;  %s7692_s5 = inlined_call_operand.vmem [shape: f32[1,64], index: 5, kind: input, shape index: {}]   ;;  %s7693_s6 = inlined_call_operand.hbm [shape: f32[128,128], index: 6, kind: input, shape index: {}]   ;;  %s7694_s7 = inlined_call_operand.hbm [shape: f32[64,64], index: 7, kind: input, shape index: {}]   ;;  %s7695_s8 = inlined_call_operand.hbm [shape: f32[64,64], index: 8, kind: input, shape index: {}]   ;;  %s7696_s9 = inlined_call_operand.vmem [shape: f32[16,64], index: 9, kind: input, shape index: {}]   ;;  %s7697_s10 = inlined_call_operand.vmem [shape: f32[64,32], index: 10, kind: input, shape index: {}]   ;;  %s7698_s11 = inlined_call_operand.hbm [shape: f32[16,32], index: 11, kind: output, shape index: {}]  }
   0x1   :  { %17 = vsyncpa [#allocation6], 0 }
   0x2   :  { %18 = vsyncpa [#allocation4], 0  ;;  %s5941_s17 = smov [#allocation5]   ;;  %s5942_s19 = smov [#allocation2]  }
   0x3   :  { %s48_s18 = sshll.u32 %s5941_s17, 4  ;;  %s36_s20 = sshll.u32 %s5942_s19, 4  ;;  %s49_s18 = int_to_ptr.vmem [resolvable:$true] %s48_s18  ;;  %s37_s20 = int_to_ptr.vmem [resolvable:$true] %s36_s20 }
   0x4   :  { %s5863_s21 = scalar_lea.vmem %s49_s18, 1024  ;;  %p5868_p1 = scmp.lt.s32.totalorder %s49_s18, %s49_s18 }
   0x5   :  { %p5864_p0 = scmp.ne.s32.totalorder %s49_s18, %s5863_s21  ;;  %p5869_p2 = scmp.lt.s32.totalorder %s5863_s21, %s5863_s21 }
   0x7   :  { %p5870_p3 = por %p5869_p2, %p5868_p1 }
   0x9   :  { %p5871_p4 = pnand %p5870_p3, %p5864_p0 }
   0xb   :  { %5874 = shalt.err (!%p5871_p4)
}
   0xc   :  { %s5943_s22 = smov 128   ;;  %s5944_s23 = smov 8  }
   0xd   :  { %54 = dma.hbm_to_vmem [thread:$0]  %s7694_s7, 1024, %s49_s18, [#allocation6], %s5943_s22, %s5943_s22, %s5944_s23  }
   0xe   :  { %s5883_s26 = scalar_lea.vmem %s37_s20, 2048  ;;  %p5888_p6 = scmp.lt.s32.totalorder %s37_s20, %s37_s20 }
   0xf   :  { %p5884_p5 = scmp.ne.s32.totalorder %s37_s20, %s5883_s26  ;;  %p5889_p7 = scmp.lt.s32.totalorder %s5883_s26, %s5883_s26 }
  0x11   :  { %p5890_p8 = por %p5889_p7, %p5888_p6 }
  0x13   :  { %p5891_p9 = pnand %p5890_p8, %p5884_p5 }
  0x15   :  { %5894 = shalt.err (!%p5891_p9)
}
  0x16   :  { %42 = dma.hbm_to_vmem [thread:$0]  %s7693_s6, 2048, %s37_s20, [#allocation3], %s5943_s22, %s5943_s22, %s5944_s23  }
  0x17   :  { %s5945_s29 = smov [#allocation7]  }
  0x18   :  { %s60_s30 = sshll.u32 %s5945_s29, 4  ;;  %s61_s30 = int_to_ptr.vmem [resolvable:$true] %s60_s30 }
  0x19   :  { %s5903_s12 = scalar_lea.vmem %s61_s30, 1024  ;;  %p5908_p11 = scmp.lt.s32.totalorder %s61_s30, %s61_s30 }
  0x1a   :  { %p5904_p10 = scmp.ne.s32.totalorder %s61_s30, %s5903_s12  ;;  %p5909_p12 = scmp.lt.s32.totalorder %s5903_s12, %s5903_s12 }
  0x1c   :  { %p5910_p13 = por %p5909_p12, %p5908_p11 }
  0x1e   :  { %p5911_p0 = pnand %p5910_p13, %p5904_p10 }
  0x20   :  { %5914 = shalt.err (!%p5911_p0)
}
  0x21   :  { %66 = dma.hbm_to_vmem [thread:$0]  %s7695_s8, 1024, %s61_s30, [#allocation6], %s5943_s22, %s5943_s22, %s5944_s23  }
  0x22   :  { %5935 = dma.done.wait [#allocation3], 2048  }
  0x23   :  { %5936 = vsyncadd [#allocation3], 4294965248 }
  0x24   :  { %5937 = dma.done.wait [#allocation6], 2048  }
  0x25   :  { %5938 = vsyncadd [#allocation6], 4294965248  ;;  %vm82_vm0 = vcmask 261120   ;;  %v80_v0 = vld [vmem:[%s7687_s0] sm:$0xff]  ;;  %v81_v1 = vld [vmem:[%s7687_s0 + $0x8] sm:$0xff]  ;;  %v7715_v28 = vmov 0.0  }
  0x26   :  { %v83_v2 = vsel %vm82_vm0, %v80_v0, 0.0  ;;  %v86_v3 = vsel %vm82_vm0, %v81_v1, 0.0  ;;  %v126_v14 = vld [vmem:[%s7689_s2 + $0x38] sm:$0xff]  ;;  %v125_v16 = vld [vmem:[%s7689_s2 + $0x30] sm:$0xff]  ;;  %v124_v18 = vld [vmem:[%s7689_s2 + $0x28] sm:$0xff]  ;;  %332 = vmatprep.mubr.f32.mxu1 %v7715_v28  ;;  %205 = vmatprep.mubr.f32.mxu0 %v7715_v28  ;;  %vm5947_vm1 = vmmov 0  }
  0x27   :  { %84 = vadd.xlane.f32.xlu0 %v83_v2  ;;  %v6049_v15 = vand.u32 4294901760, %v126_v14  ;;  %v6054_v17 = vand.u32 4294901760, %v125_v16  ;;  %v123_v19 = vld [vmem:[%s7689_s2 + $0x20] sm:$0xff]  ;;  %v122_v20 = vld [vmem:[%s7689_s2 + $0x18] sm:$0xff]  ;;  %v6068_v22 = vand.u32 4294901760, %v124_v18  ;;  %v121_v25 = vld [vmem:[%s7689_s2 + $0x10] sm:$0xff] }
  0x28   :  { %v6070_v23 = vand.u32 4294901760, %v123_v19  ;;  %v6072_v24 = vand.u32 4294901760, %v122_v20  ;;  %v120_v26 = vld [vmem:[%s7689_s2 + $0x8] sm:$0xff]  ;;  %v119_v27 = vld [vmem:[%s7689_s2] sm:$0xff]  ;;  %v6088_v30 = vand.u32 4294901760, %v121_v25  ;;  %vm1571_vm2 = vcmask 523264  }
  0x29   :  { %v6066_v21 = vsub.f32 %v126_v14, %v6049_v15  ;;  %158 = vmatprep.subr.mxu0 %v6049_v15  ;;  %v6086_v29 = vsub.f32 %v125_v16, %v6054_v17  ;;  %v6090_v31 = vand.u32 4294901760, %v120_v26  ;;  %v6092_v32 = vand.u32 4294901760, %v119_v27 }
  0x2a   :  { %160 = vmatpush1.msra.mxu0 %v6054_v17  ;;  %v6098_v34 = vsub.f32 %v124_v18, %v6068_v22  ;;  %v6101_v35 = vsub.f32 %v123_v19, %v6070_v23  ;;  %v6104_v36 = vsub.f32 %v122_v20, %v6072_v24  ;;  %v6109_v38 = vsub.f32 %v121_v25, %v6088_v30 }
  0x2b   :  { %87 = vadd.xlane.f32.xlu0 %v86_v3  ;;  %v254_v33 = vand.u32 4294901760, %v6066_v21  ;;  %162 = vmatprep.subr.mxu0 %v6068_v22  ;;  %v260_v37 = vand.u32 4294901760, %v6086_v29  ;;  %v6112_v39 = vsub.f32 %v120_v26, %v6090_v31  ;;  %v6115_v40 = vsub.f32 %v119_v27, %v6092_v32 }
  0x2c   :  { %164 = vmatpush1.msra.mxu0 %v6070_v23  ;;  %v266_v42 = vand.u32 4294901760, %v6098_v34  ;;  %v272_v43 = vand.u32 4294901760, %v6101_v35  ;;  %v278_v44 = vand.u32 4294901760, %v6104_v36  ;;  %v284_v46 = vand.u32 4294901760, %v6109_v38 }
  0x2d   :  { %v255_v41 = vsub.f32 %v6066_v21, %v254_v33  ;;  %166 = vmatprep.subr.mxu0 %v6072_v24  ;;  %v261_v45 = vsub.f32 %v6086_v29, %v260_v37  ;;  %v290_v47 = vand.u32 4294901760, %v6112_v39  ;;  %v296_v48 = vand.u32 4294901760, %v6115_v40 }
  0x2e   :  { %168 = vmatpush1.msra.mxu0 %v6088_v30  ;;  %v267_v50 = vsub.f32 %v6098_v34, %v266_v42  ;;  %v273_v51 = vsub.f32 %v6101_v35, %v272_v43  ;;  %v279_v52 = vsub.f32 %v6104_v36, %v278_v44  ;;  %v285_v54 = vsub.f32 %v6109_v38, %v284_v46 }
  0x2f   :  { %v256_v49 = vand.u32 4294901760, %v255_v41  ;;  %170 = vmatprep.subr.mxu0 %v6090_v31  ;;  %v262_v53 = vand.u32 4294901760, %v261_v45  ;;  %v291_v55 = vsub.f32 %v6112_v39, %v290_v47  ;;  %v297_v56 = vsub.f32 %v6115_v40, %v296_v48 }
  0x30   :  { %172 = vmatpush1.msra.mxu0 %v6092_v32  ;;  %v268_v57 = vand.u32 4294901760, %v267_v50  ;;  %v274_v58 = vand.u32 4294901760, %v273_v51  ;;  %v280_v59 = vand.u32 4294901760, %v279_v52  ;;  %v286_v60 = vand.u32 4294901760, %v285_v54  ;;  %v738_v51 = vld [vmem:[#allocation2 + $0x48] sm:$0xff] }
  0x31   :  { %257 = vmatprep.subr.mxu1 %v256_v49  ;;  %373 = vmatprep.subr.mxu0 %v6066_v21  ;;  %v292_v61 = vand.u32 4294901760, %v291_v55  ;;  %v298_v62 = vand.u32 4294901760, %v297_v56  ;;  %v743_v21 = vld [vmem:[#allocation2 + $0x70] sm:$0xff]  ;;  %v6267_v55 = vand.u32 4294901760, %v738_v51 }
  0x32   :  { %263 = vmatpush1.msra.mxu1 %v262_v53 }
  0x33   :  { %269 = vmatprep.subr.mxu1 %v268_v57  ;;  %v737_v57 = vld [vmem:[#allocation2 + $0x40] sm:$0xff] }
  0x34   :  { %275 = vmatpush1.msra.mxu1 %v274_v58 }
  0x35   :  { %281 = vmatprep.subr.mxu1 %v280_v59 }
  0x36   :  { %287 = vmatpush1.msra.mxu1 %v286_v60  ;;  %v6275_v60 = vsub.f32 %v738_v51, %v6267_v55  ;;  %v730_v51 = vld [vmem:[#allocation2 + $0x8] sm:$0xff] }
  0x37   :  { %293 = vmatprep.subr.mxu1 %v292_v61  ;;  %v6277_v61 = vand.u32 4294901760, %v737_v57 }
  0x38   :  { %299 = vmatpush1.msra.mxu1 %v298_v62 }
  0x39   :  { %469 = vmatprep.subr.mxu1 %v6049_v15 }
  0xb0   :  { %v85_v4 = vpop.xlane.xlu0 %84 }
  0xb1   :  { %v90_v5 = vmul.f32 0.03125, %v85_v4 }
  0xb3   :  { %v6036_v6 = vsub.f32 %v80_v0, %v90_v5 }
  0xb4   :  { %v88_v7 = vpop.xlane.xlu0 %87 }
  0xb5   :  { %v91_v8 = vmul.f32 0.03125, %v88_v7  ;;  %v94_v9 = vmul.f32 %v6036_v6, %v6036_v6  ;;  %v4583_v7 = vld [vmem:[%s7688_s1] ss:$0 sm:$0xff]  ;;  %s5948_s1 = smov 64  }
  0xb7   :  { %v6040_v10 = vsub.f32 %v81_v1, %v91_v8  ;;  %v96_v11 = vsel %vm82_vm0, %v94_v9, 0.0 }
  0xb8   :  { %97 = vadd.xlane.f32.xlu1 %v96_v11 }
  0xb9   :  { %v95_v12 = vmul.f32 %v6040_v10, %v6040_v10 }
  0xbb   :  { %v99_v13 = vsel %vm82_vm0, %v95_v12, 0.0 }
  0xbc   :  { %100 = vadd.xlane.f32.xlu1 %v99_v13 }
 0x141   :  { %v98_v63 = vpop.xlane.xlu1 %97 }
 0x142   :  { %v102_v0 = vmul.f32 0.03125, %v98_v63  ;;  %v736_v63 = vld [vmem:[#allocation2 + $0x38] sm:$0xff] }
 0x144   :  { %v104_v1 = vadd.f32 1e-05, %v102_v0 }
 0x145   :  { %v101_v2 = vpop.xlane.xlu1 %100 }
 0x146   :  { %5825 = vrsqrt.f32 %v104_v1  ;;  %v103_v3 = vmul.f32 0.03125, %v101_v2  ;;  %v7708_v1 = vand.u32 4294901760, %v6275_v60  ;;  %v6290_v2 = vsub.f32 %v737_v57, %v6277_v61 }
 0x148   :  { %v105_v4 = vadd.f32 1e-05, %v103_v3  ;;  %v6292_v3 = vand.u32 4294901760, %v736_v63 }
 0x14a   :  { %5827 = vrsqrt.f32 %v105_v4 }
 0x153   :  { %v5826_v5 = vpop.eup %5825 }
 0x154   :  { %v108_v8 = vmul.f32 %v5826_v5, %v6036_v6  ;;  %v735_v5 = vld [vmem:[#allocation2 + $0x30] sm:$0xff] }
 0x156   :  { %v117_v9 = vmul.f32 %v4583_v7, %v108_v8  ;;  %v902_v8 = vsub.f32 %v6275_v60, %v7708_v1 }
 0x157   :  { %v5828_v11 = vpop.eup %5827 }
 0x158   :  { %v128_v12 = vsel %vm82_vm0, %v117_v9, 0  ;;  %v109_v13 = vmul.f32 %v5828_v11, %v6040_v10  ;;  %v7707_v9 = vand.u32 4294901760, %v6290_v2  ;;  %v6302_v11 = vsub.f32 %v736_v63, %v6292_v3  ;;  %v729_v63 = vld [vmem:[#allocation2] sm:$0xff] }
 0x159   :  { %v206_v14 = vand.u32 4294901760, %v128_v12 }
 0x15a   :  { %v118_v16 = vmul.f32 %v4583_v7, %v109_v13  ;;  %v734_v13 = vld [vmem:[#allocation2 + $0x28] sm:$0xff] }
 0x15b   :  { %334 = vmatmul.mubr.f32.vlgmr.msra.gmra.mxu1 %v206_v14  ;;  %v207_v18 = vsub.f32 %v128_v12, %v206_v14  ;;  %v6305_v12 = vand.u32 4294901760, %v735_v5 }
 0x15c   :  { %471 = vmatpush1.msra.mxu1 %v6054_v17  ;;  %339 = vmatprep.mubr.f32.mxu1 %v7715_v28  ;;  %v131_v19 = vsel %vm82_vm0, %v118_v16, 0  ;;  %v909_v16 = vsub.f32 %v6290_v2, %v7707_v9 }
 0x15d   :  { %473 = vmatprep.subr.mxu1 %v6068_v22  ;;  %v217_v20 = vand.u32 4294901760, %v131_v19  ;;  %v208_v6 = vand.u32 4294901760, %v207_v18 }
 0x15e   :  { %475 = vmatpush1.msra.mxu1 %v6070_v23 }
 0x15f   :  { %341 = vmatmul.mubr.f32.gmra.mxu1 %v217_v20  ;;  %477 = vmatprep.subr.mxu1 %v6072_v24  ;;  %v209_v10 = vsub.f32 %v207_v18, %v208_v6  ;;  %v218_v25 = vsub.f32 %v131_v19, %v217_v20  ;;  %v6313_v19 = vand.u32 4294901760, %v734_v13 }
 0x160   :  { %479 = vmatpush1.msra.mxu1 %v6088_v30  ;;  %516 = vmatprep.mubr.f32.mxu1 %v7715_v28 }
 0x161   :  { %481 = vmatprep.subr.mxu1 %v6090_v31  ;;  %v210_v26 = vand.u32 4294901760, %v209_v10  ;;  %v219_v27 = vand.u32 4294901760, %v218_v25  ;;  %v910_v10 = vand.u32 4294901760, %v909_v16 }
 0x162   :  { %483 = vmatpush1.msra.mxu1 %v6092_v32 }
 0x163   :  { %211 = vmatmul.mubr.f32.vlgmr.msra.gmra.mxu0 %v210_v26  ;;  %520 = vmatmul.mubr.f32.vlgmr.msra.gmra.mxu1 %v208_v6  ;;  %v220_v41 = vsub.f32 %v218_v25, %v219_v27  ;;  %v733_v6 = vld [vmem:[#allocation2 + $0x20] sm:$0xff]  ;;  %v6325_v26 = vsub.f32 %v734_v13, %v6313_v19 }
 0x164   :  { %376 = vmatpush1.msra.mxu0 %v6086_v29  ;;  %663 = vmatprep.subr.mxu1 %v6049_v15  ;;  %v744_v15 = vld [vmem:[#allocation2 + $0x78] sm:$0xff] }
 0x165   :  { %379 = vmatprep.subr.mxu0 %v6098_v34  ;;  %665 = vmatpush1.msra.mxu1 %v6054_v17  ;;  %v221_v45 = vand.u32 4294901760, %v220_v41  ;;  %v6211_v17 = vand.u32 4294901760, %v744_v15 }
 0x166   :  { %382 = vmatpush1.msra.mxu0 %v6101_v35  ;;  %667 = vmatprep.subr.mxu1 %v6068_v22 }
 0x167   :  { %216 = vmatprep.mubr.f32.mxu0 %v7715_v28  ;;  %385 = vmatprep.subr.mxu0 %v6104_v36  ;;  %v6214_v22 = vsub.f32 %v744_v15, %v6211_v17 }
 0x168   :  { %525 = vmatprep.mubr.f32.mxu1 %v7715_v28  ;;  %669 = vmatpush1.msra.mxu1 %v6070_v23  ;;  %v6216_v23 = vand.u32 4294901760, %v743_v21 }
 0x169   :  { %222 = vmatmul.mubr.f32.gmra.mxu0 %v221_v45  ;;  %529 = vmatmul.mubr.f32.gmra.mxu1 %v219_v27  ;;  %v7714_v29 = vand.u32 4294901760, %v6214_v22  ;;  %v6327_v27 = vand.u32 4294901760, %v733_v6  ;;  %v732_v45 = vld [vmem:[#allocation2 + $0x18] sm:$0xff] }
 0x16a   :  { %388 = vmatpush1.msra.mxu0 %v6109_v38  ;;  %671 = vmatprep.subr.mxu1 %v6072_v24  ;;  %v742_v24 = vld [vmem:[#allocation2 + $0x68] sm:$0xff] }
 0x16b   :  { %391 = vmatprep.subr.mxu0 %v6112_v39  ;;  %673 = vmatpush1.msra.mxu1 %v6088_v30  ;;  %v6222_v30 = vsub.f32 %v743_v21, %v6216_v23  ;;  %v7704_v21 = vand.u32 4294901760, %v6325_v26 }
 0x16c   :  { %394 = vmatpush1.msra.mxu0 %v6115_v40  ;;  %675 = vmatprep.subr.mxu1 %v6090_v31  ;;  %v6224_v31 = vand.u32 4294901760, %v742_v24 }
 0x16d   :  { %427 = vmatprep.mubr.f32.mxu0 %v7715_v28  ;;  %562 = vmatprep.subr.mxu0 %v254_v33  ;;  %v860_v33 = vsub.f32 %v6214_v22, %v7714_v29  ;;  %v7713_v34 = vand.u32 4294901760, %v6222_v30 }
 0x16e   :  { %677 = vmatpush1.msra.mxu1 %v6092_v32  ;;  %710 = vmatprep.mubr.f32.mxu1 %v7715_v28  ;;  %v741_v32 = vld [vmem:[#allocation2 + $0x60] sm:$0xff]  ;;  %v6233_v35 = vsub.f32 %v742_v24, %v6224_v31  ;;  %v6335_v24 = vsub.f32 %v733_v6, %v6327_v27 }
 0x16f   :  { %430 = vmatmul.mubr.f32.vlgmr.msra.gmra.mxu0 %v207_v18  ;;  %712 = vmatmul.mubr.f32.vlgmr.msra.gmra.mxu1 %v206_v14  ;;  %v6235_v36 = vand.u32 4294901760, %v741_v32  ;;  %v861_v38 = vand.u32 4294901760, %v860_v33  ;;  %v867_v39 = vsub.f32 %v6222_v30, %v7713_v34  ;;  %v7706_v18 = vand.u32 4294901760, %v6302_v11 }
 0x170   :  { %566 = vmatpush1.msra.mxu0 %v260_v37  ;;  %435 = vmatprep.mubr.f32.mxu0 %v7715_v28  ;;  %v740_v37 = vld [vmem:[#allocation2 + $0x58] sm:$0xff]  ;;  %v7712_v40 = vand.u32 4294901760, %v6233_v35  ;;  %7729 = vst [vmem:[#allocation12_spill] sm:$0xff] %v6335_v24 }
 0x171   :  { %570 = vmatprep.subr.mxu0 %v266_v42  ;;  %717 = vmatprep.mubr.f32.mxu1 %v7715_v28  ;;  %v6244_v42 = vsub.f32 %v741_v32, %v6235_v36  ;;  %v6337_v32 = vand.u32 4294901760, %v732_v45 }
 0x172   :  { %574 = vmatpush1.msra.mxu0 %v272_v43  ;;  %5041 = vmatprep.subr.mxu1 %v7715_v28  ;;  %v6247_v43 = vand.u32 4294901760, %v740_v37 }
 0x173   :  { %578 = vmatprep.subr.mxu0 %v278_v44  ;;  %438 = vmatmul.mubr.f32.gmra.mxu0 %v218_v25  ;;  %v739_v44 = vld [vmem:[#allocation2 + $0x50] sm:$0xff]  ;;  %v916_v25 = vsub.f32 %v6302_v11, %v7706_v18 }
 0x174   :  { %582 = vmatpush1.msra.mxu0 %v284_v46  ;;  %719 = vmatmul.mubr.f32.gmra.mxu1 %v217_v20  ;;  %v868_v46 = vand.u32 4294901760, %v867_v39  ;;  %v6254_v49 = vand.u32 4294901760, %v739_v44  ;;  %v6258_v50 = vsub.f32 %v740_v37, %v6247_v43  ;;  %v731_v37 = vld [vmem:[#allocation2 + $0x10] sm:$0xff]  ;;  %v7703_v39 = vand.u32 4294901760, %v6335_v24 }
 0x175   :  { %586 = vmatprep.subr.mxu0 %v290_v47  ;;  %623 = vmatprep.mubr.f32.mxu0 %v7715_v28  ;;  %v874_v47 = vsub.f32 %v6233_v35, %v7712_v40  ;;  %v917_v15 = vand.u32 4294901760, %v916_v25 }
 0x176   :  { %590 = vmatpush1.msra.mxu0 %v296_v48  ;;  %5042 = vmatpush3.msra.mxu1 %v861_v38  ;;  %v7711_v48 = vand.u32 4294901760, %v6244_v42  ;;  %v6265_v54 = vsub.f32 %v739_v44, %v6254_v49  ;;  %v7710_v56 = vand.u32 4294901760, %v6258_v50  ;;  %v930_v38 = vsub.f32 %v6325_v26, %v7704_v21 }
 0x177   :  { %625 = vmatmul.mubr.f32.vlgmr.msra.gmra.mxu0 %v206_v14  ;;  %5000 = vmatprep.subr.mxu0 %v7715_v28  ;;  %v875_v52 = vand.u32 4294901760, %v874_v47  ;;  %v903_v14 = vand.u32 4294901760, %v902_v8  ;;  %v6350_v44 = vsub.f32 %v732_v45, %v6337_v32 }
 0x178   :  { %630 = vmatprep.mubr.f32.mxu0 %v7715_v28  ;;  %5001 = vmatpush3.msra.mxu0 %v6211_v17  ;;  %v881_v53 = vsub.f32 %v6244_v42, %v7711_v48  ;;  %v7709_v59 = vand.u32 4294901760, %v6265_v54  ;;  %v888_v62 = vsub.f32 %v6258_v50, %v7710_v56 }
 0x179   :  { %5002 = vmatprep.subr.mxu0 %v7715_v28  ;;  %5043 = vmatprep.subr.mxu1 %v7715_v28  ;;  %7730 = vst [vmem:[#allocation13_spill] sm:$0xff] %v6350_v44  ;;  %v7702_v57 = vand.u32 4294901760, %v6350_v44 }
 0x17a   :  { %5003 = vmatpush3.msra.mxu0 %v6216_v23  ;;  %5044 = vmatpush3.msra.mxu1 %v868_v46  ;;  %v882_v58 = vand.u32 4294901760, %v881_v53  ;;  %v895_v0 = vsub.f32 %v6265_v54, %v7709_v59  ;;  %v889_v4 = vand.u32 4294901760, %v888_v62  ;;  %v6352_v46 = vand.u32 4294901760, %v731_v37 }
 0x17b   :  { %632 = vmatmul.mubr.f32.gmra.mxu0 %v217_v20  ;;  %5004 = vmatprep.subr.mxu0 %v7715_v28  ;;  %v6317_v20 = vsub.f32 %v735_v5, %v6305_v12  ;;  %v937_v53 = vsub.f32 %v6335_v24, %v7703_v39  ;;  %v6365_v62 = vand.u32 4294901760, %v730_v51 }
 0x17c   :  { %5005 = vmatpush3.msra.mxu0 %v6224_v31  ;;  %5045 = vmatprep.subr.mxu1 %v7715_v28  ;;  %v896_v7 = vand.u32 4294901760, %v895_v0 }
 0x17d   :  { %5006 = vmatprep.subr.mxu0 %v7715_v28  ;;  %5046 = vmatpush3.msra.mxu1 %v875_v52  ;;  %v7705_v41 = vand.u32 4294901760, %v6317_v20  ;;  %v931_v52 = vand.u32 4294901760, %v930_v38  ;;  %v938_v0 = vand.u32 4294901760, %v937_v53  ;;  %v6377_v8 = vsub.f32 %v730_v51, %v6365_v62  ;;  %v1497_v38 = vld [vmem:[#allocation7 + $0x30] sm:$0xff]  ;;  %v6412_v53 = vld [vmem:[#allocation7 + $0x28] sm:$0xff] }
 0x17e   :  { %5007 = vmatpush3.msra.mxu0 %v6235_v36  ;;  %5047 = vmatprep.subr.mxu1 %v7715_v28 }
 0x17f   :  { %5008 = vmatprep.subr.mxu0 %v7715_v28  ;;  %5048 = vmatpush3.msra.mxu1 %v882_v58  ;;  %v923_v33 = vsub.f32 %v6317_v20, %v7705_v41  ;;  %v6362_v58 = vsub.f32 %v731_v37, %v6352_v46  ;;  %7733 = vst [vmem:[#allocation16_spill] sm:$0xff] %v6377_v8  ;;  %v7700_v6 = vand.u32 4294901760, %v6377_v8 }
 0x180   :  { %5009 = vmatpush3.msra.mxu0 %v6247_v43  ;;  %5049 = vmatprep.subr.mxu1 %v7715_v28 }
 0x181   :  { %5010 = vmatprep.subr.mxu0 %v7715_v28  ;;  %5050 = vmatpush3.msra.mxu1 %v889_v4  ;;  %v924_v47 = vand.u32 4294901760, %v923_v33  ;;  %7731 = vst [vmem:[#allocation14_spill] sm:$0xff] %v6362_v58  ;;  %v944_v4 = vsub.f32 %v6350_v44, %v7702_v57  ;;  %v7701_v5 = vand.u32 4294901760, %v6362_v58  ;;  %v958_v45 = vsub.f32 %v6377_v8, %v7700_v6 }
 0x182   :  { %5011 = vmatpush3.msra.mxu0 %v6254_v49  ;;  %5051 = vmatprep.subr.mxu1 %v7715_v28 }
 0x183   :  { %5012 = vmatprep.subr.mxu0 %v7715_v28  ;;  %5052 = vmatpush3.msra.mxu1 %v896_v7  ;;  %v6373_v7 = vand.u32 4294901760, %v729_v63  ;;  %v945_v13 = vand.u32 4294901760, %v944_v4  ;;  %v959_v33 = vand.u32 4294901760, %v958_v45 }
 0x184   :  { %5013 = vmatpush3.msra.mxu0 %v6267_v55  ;;  %5053 = vmatprep.subr.mxu1 %v7715_v28 }
 0x185   :  { %5014 = vmatprep.subr.mxu0 %v7715_v28  ;;  %5054 = vmatpush3.msra.mxu1 %v903_v14  ;;  %7732 = vst [vmem:[#allocation15_spill] sm:$0xff] %v6373_v7  ;;  %v951_v14 = vsub.f32 %v6362_v58, %v7701_v5  ;;  %v6385_v16 = vsub.f32 %v729_v63, %v6373_v7  ;;  %v6414_v63 = vld [vmem:[#allocation7 + $0x18] sm:$0xff]  ;;  %v1491_v5 = vld [vmem:[#allocation7] sm:$0xff] }
 0x186   :  { %5015 = vmatpush3.msra.mxu0 %v6277_v61  ;;  %5055 = vmatprep.subr.mxu1 %v7715_v28 }
 0x187   :  { %5016 = vmatprep.subr.mxu0 %v7715_v28  ;;  %5056 = vmatpush3.msra.mxu1 %v910_v10  ;;  %7734 = vst [vmem:[#allocation17_spill] sm:$0xff] %v6385_v16  ;;  %v952_v10 = vand.u32 4294901760, %v951_v14  ;;  %v7699_v25 = vand.u32 4294901760, %v6385_v16  ;;  %v6420_v14 = vld [vmem:[#allocation7 + $0x8] sm:$0xff] }
 0x188   :  { %5017 = vmatpush3.msra.mxu0 %v6292_v3  ;;  %5057 = vmatprep.subr.mxu1 %v7715_v28 }
 0x189   :  { %5018 = vmatprep.subr.mxu0 %v7715_v28  ;;  %5058 = vmatpush3.msra.mxu1 %v917_v15  ;;  %v965_v15 = vsub.f32 %v6385_v16, %v7699_v25 }
 0x18a   :  { %5019 = vmatpush3.msra.mxu0 %v6305_v12  ;;  %5059 = vmatprep.subr.mxu1 %v7715_v28 }
 0x18b   :  { %5020 = vmatprep.subr.mxu0 %v7715_v28  ;;  %5060 = vmatpush3.msra.mxu1 %v924_v47  ;;  %v966_v37 = vand.u32 4294901760, %v965_v15  ;;  %v6407_v47 = vld [vmem:[#allocation7 + $0x38] sm:$0xff] }
 0x18c   :  { %5021 = vmatpush3.msra.mxu0 %v6313_v19  ;;  %5061 = vmatprep.subr.mxu1 %v7715_v28 }
 0x18d   :  { %5022 = vmatprep.subr.mxu0 %v7715_v28  ;;  %5062 = vmatpush3.msra.mxu1 %v931_v52 }
 0x18e   :  { %5023 = vmatpush3.msra.mxu0 %v6327_v27  ;;  %5063 = vmatprep.subr.mxu1 %v7715_v28 }
 0x18f   :  { %5024 = vmatprep.subr.mxu0 %v7715_v28  ;;  %5064 = vmatpush3.msra.mxu1 %v938_v0 }
 0x190   :  { %5025 = vmatpush3.msra.mxu0 %v6337_v32  ;;  %5065 = vmatprep.subr.mxu1 %v7715_v28 }
 0x191   :  { %5026 = vmatprep.subr.mxu0 %v7715_v28  ;;  %5066 = vmatpush3.msra.mxu1 %v945_v13  ;;  %v1495_v13 = vld [vmem:[#allocation7 + $0x20] sm:$0xff] }
 0x192   :  { %5027 = vmatpush3.msra.mxu0 %v6352_v46  ;;  %5067 = vmatprep.subr.mxu1 %v7715_v28 }
 0x193   :  { %5028 = vmatprep.subr.mxu0 %v7715_v28  ;;  %5068 = vmatpush3.msra.mxu1 %v952_v10 }
 0x194   :  { %5029 = vmatpush3.msra.mxu0 %v6365_v62  ;;  %5069 = vmatprep.subr.mxu1 %v7715_v28 }
 0x195   :  { %5030 = vmatprep.subr.mxu0 %v7715_v28  ;;  %5070 = vmatpush3.msra.mxu1 %v959_v33  ;;  %v1493_v33 = vld [vmem:[#allocation7 + $0x10] sm:$0xff] }
 0x196   :  { %5031 = vmatpush3.msra.mxu0 %v6373_v7  ;;  %5071 = vmatprep.subr.mxu1 %v7715_v28 }
 0x197   :  { %5082 = vmatprep.subr.mxu0 %v7715_v28  ;;  %5072 = vmatpush3.msra.mxu1 %v966_v37 }
 0x198   :  { %5073 = vmatprep.mubr.msk.f32.mxu1 %vm5947_vm1, %v7715_v28  ;;  %5123 = vmatprep.subr.mxu1 %v7715_v28 }
 0x199   :  { %5032 = vmatprep.mubr.msk.f32.mxu0 %vm5947_vm1, %v7715_v28  ;;  %1519 = vrot.lane.b32.xlu1 %v1497_v38, %s5948_s1 }
 0x19a   :  { %1521 = vrot.lane.b32.xlu0 %v6407_v47, %s5948_s1 }
 0x19d   :  { %1517 = vrot.lane.b32.xlu1 %v6412_v53, %s5948_s1 }
 0x19e   :  { %1513 = vrot.lane.b32.xlu0 %v6414_v63, %s5948_s1 }
 0x1a1   :  { %1515 = vrot.lane.b32.xlu1 %v1495_v13, %s5948_s1 }
 0x1a2   :  { %1509 = vrot.lane.b32.xlu0 %v6420_v14, %s5948_s1 }
 0x1a5   :  { %1511 = vrot.lane.b32.xlu1 %v1493_v33, %s5948_s1 }
 0x1a9   :  { %1507 = vrot.lane.b32.xlu1 %v1491_v5, %s5948_s1 }
 0x21b   :  { %v335_v51 = vpop.f32.mrf.mxu1 }
 0x21d   :  { %v337_v52 = vpop.f32.mrf.mxu1 }
 0x21f   :  { %v342_v0 = vpop.f32.mrf.mxu1 }
 0x221   :  { %v344_v4 = vpop.f32.mrf.mxu1 }
 0x223   :  { %v212_v10 = vpop.f32.mrf.mxu0  ;;  %v521_v45 = vpop.f32.mrf.mxu1 }
 0x224   :  { %v336_v9 = vadd.f32 %v335_v51, %v212_v10 }
 0x225   :  { %v214_v15 = vpop.f32.mrf.mxu0  ;;  %v523_v25 = vpop.f32.mrf.mxu1 }
 0x226   :  { %v338_v37 = vadd.f32 %v337_v52, %v214_v15 }
 0x229   :  { %v223_v6 = vpop.f32.mrf.mxu0  ;;  %v530_v57 = vpop.f32.mrf.mxu1 }
 0x22a   :  { %v343_v34 = vadd.f32 %v342_v0, %v223_v6 }
 0x22b   :  { %v225_v39 = vpop.f32.mrf.mxu0  ;;  %v532_v41 = vpop.f32.mrf.mxu1 }
 0x22c   :  { %v345_v21 = vadd.f32 %v344_v4, %v225_v39 }
 0x22f   :  { %v431_v18 = vpop.f32.mrf.mxu0  ;;  %v713_v48 = vpop.f32.mrf.mxu1 }
 0x230   :  { %v432_v59 = vadd.f32 %v431_v18, %v336_v9 }
 0x231   :  { %v433_v1 = vpop.f32.mrf.mxu0  ;;  %v715_v8 = vpop.f32.mrf.mxu1 }
 0x232   :  { %v434_v56 = vadd.f32 %v433_v1, %v338_v37  ;;  %v522_v16 = vadd.f32 %v521_v45, %v432_v59  ;;  %v6496_v45 = vld [vmem:[%s7691_s4] sm:$0x1] }
 0x233   :  { %v439_v40 = vpop.f32.mrf.mxu0 }
 0x234   :  { %v524_v52 = vadd.f32 %v523_v25, %v434_v56  ;;  %v440_v29 = vadd.f32 %v439_v40, %v343_v34  ;;  %v720_v10 = vpop.f32.mrf.mxu1 }
 0x235   :  { %v441_v15 = vpop.f32.mrf.mxu0 }
 0x236   :  { %v442_v28 = vadd.f32 %v441_v15, %v345_v21  ;;  %v531_v51 = vadd.f32 %v530_v57, %v440_v29 }
 0x237   :  { %v626_v58 = vpop.f32.mrf.mxu0 }
 0x238   :  { %v627_v44 = vadd.f32 %v626_v58, %v522_v16  ;;  %v533_v7 = vadd.f32 %v532_v41, %v442_v28  ;;  %v722_v28 = vpop.f32.mrf.mxu1  ;;  %v7735_v58 = vmov 0.0  }
 0x239   :  { %v628_v24 = vpop.f32.mrf.mxu0 }
 0x23a   :  { %v6427_v39 = vadd.f32 %v713_v48, %v627_v44  ;;  %v629_v4 = vadd.f32 %v628_v24, %v524_v52 }
 0x23b   :  { %v633_v9 = vpop.f32.mrf.mxu0 }
 0x23c   :  { %v726_v1 = vmul.f32 %v6427_v39, %v6427_v39  ;;  %v716_v18 = vadd.f32 %v715_v8, %v629_v4  ;;  %v634_v56 = vadd.f32 %v633_v9, %v531_v51  ;;  %v7736_v51 = vld [vmem:[#allocation12_spill] sm:$0xff] }
 0x23d   :  { %v635_v6 = vpop.f32.mrf.mxu0 }
 0x23e   :  { %v6431_v34 = vand.u32 4294901760, %v726_v1  ;;  %v6433_v40 = vadd.f32 %v720_v10, %v634_v56  ;;  %v636_v59 = vadd.f32 %v635_v6, %v533_v7  ;;  %v6435_v21 = vmul.f32 %v1497_v38, %v716_v18  ;;  %v7737_v10 = vld [vmem:[#allocation15_spill] sm:$0xff]  ;;  %v7741_v56 = vld [vmem:[#allocation17_spill] sm:$0xff] }
 0x23f   :  { %v6437_v48 = vmul.f32 %v1495_v13, %v716_v18  ;;  %v6439_v41 = vmul.f32 %v1493_v33, %v716_v18  ;;  %v6441_v29 = vmul.f32 %v1491_v5, %v716_v18  ;;  %v728_v33 = vmul.f32 %v6496_v45, %v6496_v45  ;;  %v7739_v18 = vld [vmem:[#allocation14_spill] sm:$0xff] }
 0x240   :  { %v6444_v24 = vsub.f32 %v726_v1, %v6431_v34  ;;  %v727_v44 = vmul.f32 %v6433_v40, %v6433_v40  ;;  %v723_v57 = vadd.f32 %v722_v28, %v636_v59  ;;  %5074 = vmatmul.mubr.f32.vlgmr.msra.gmra.mxu1 %v6431_v34  ;;  %v7738_v1 = vld [vmem:[#allocation13_spill] sm:$0xff] }
 0x241   :  { %5124 = vmatpush3.msra.mxu1 %v6211_v17  ;;  %5076 = vmatprep.mubr.msk.f32.mxu1 %vm5947_vm1, %v7735_v58  ;;  %v6514_v37 = vand.u32 4294901760, %v728_v33 }
 0x242   :  { %v828_v7 = vand.u32 4294901760, %v6444_v24  ;;  %v6453_v8 = vand.u32 4294901760, %v727_v44  ;;  %5125 = vmatprep.subr.mxu1 %v7735_v58  ;;  %v6457_v5 = vmul.f32 %v6412_v53, %v723_v57  ;;  %v6461_v16 = vmul.f32 %v6407_v47, %v723_v57 }
 0x243   :  { %5126 = vmatpush3.msra.mxu1 %v6216_v23  ;;  %v6464_v25 = vmul.f32 %v6414_v63, %v723_v57  ;;  %v6478_v47 = vmul.f32 %v6420_v14, %v723_v57  ;;  %v6525_v52 = vsub.f32 %v728_v33, %v6514_v37 }
 0x244   :  { %v829_v38 = vsub.f32 %v6444_v24, %v828_v7  ;;  %v6470_v0 = vsub.f32 %v727_v44, %v6453_v8  ;;  %5127 = vmatprep.subr.mxu1 %v7735_v58  ;;  %5077 = vmatmul.mubr.f32.gmra.mxu1 %v6453_v8 }
 0x245   :  { %5128 = vmatpush3.msra.mxu1 %v6224_v31  ;;  %5079 = vmatprep.mubr.msk.f32.mxu1 %vm5947_vm1, %v7735_v58  ;;  %v848_v15 = vand.u32 4294901760, %v6525_v52 }
 0x246   :  { %v830_v53 = vand.u32 4294901760, %v829_v38  ;;  %5129 = vmatprep.subr.mxu1 %v7735_v58  ;;  %v838_v63 = vand.u32 4294901760, %v6470_v0 }
 0x247   :  { %5130 = vmatpush3.msra.mxu1 %v6235_v36  ;;  %v849_v4 = vsub.f32 %v6525_v52, %v848_v15 }
 0x248   :  { %5131 = vmatprep.subr.mxu1 %v7735_v58  ;;  %5033 = vmatmul.mubr.f32.vlgmr.msra.gmra.mxu0 %v830_v53  ;;  %v839_v13 = vsub.f32 %v6470_v0, %v838_v63 }
 0x249   :  { %5083 = vmatpush3.msra.mxu0 %v6214_v22  ;;  %5132 = vmatpush3.msra.mxu1 %v6247_v43  ;;  %v850_v9 = vand.u32 4294901760, %v849_v4 }
 0x24a   :  { %5084 = vmatprep.subr.mxu0 %v7735_v58  ;;  %5133 = vmatprep.subr.mxu1 %v7735_v58  ;;  %v840_v14 = vand.u32 4294901760, %v839_v13 }
 0x24b   :  { %5085 = vmatpush3.msra.mxu0 %v6222_v30  ;;  %5134 = vmatpush3.msra.mxu1 %v6254_v49 }
 0x24c   :  { %5035 = vmatprep.mubr.msk.f32.mxu0 %vm5947_vm1, %v7735_v58  ;;  %5086 = vmatprep.subr.mxu0 %v7735_v58 }
 0x24d   :  { %5135 = vmatprep.subr.mxu1 %v7735_v58  ;;  %5036 = vmatmul.mubr.f32.gmra.mxu0 %v840_v14 }
 0x24e   :  { %5087 = vmatpush3.msra.mxu0 %v6233_v35  ;;  %5136 = vmatpush3.msra.mxu1 %v6267_v55 }
 0x24f   :  { %5088 = vmatprep.subr.mxu0 %v7735_v58  ;;  %5137 = vmatprep.subr.mxu1 %v7735_v58 }
 0x250   :  { %5089 = vmatpush3.msra.mxu0 %v6244_v42  ;;  %5138 = vmatpush3.msra.mxu1 %v6277_v61 }
 0x251   :  { %5090 = vmatprep.subr.mxu0 %v7735_v58  ;;  %5139 = vmatprep.subr.mxu1 %v7735_v58 }
 0x252   :  { %5091 = vmatpush3.msra.mxu0 %v6258_v50  ;;  %5140 = vmatpush3.msra.mxu1 %v6292_v3 }
 0x253   :  { %5092 = vmatprep.subr.mxu0 %v7735_v58  ;;  %5141 = vmatprep.subr.mxu1 %v7735_v58 }
 0x254   :  { %5093 = vmatpush3.msra.mxu0 %v6265_v54  ;;  %5142 = vmatpush3.msra.mxu1 %v6305_v12 }
 0x255   :  { %5094 = vmatprep.subr.mxu0 %v7735_v58  ;;  %5143 = vmatprep.subr.mxu1 %v7735_v58 }
 0x256   :  { %5095 = vmatpush3.msra.mxu0 %v6275_v60  ;;  %5144 = vmatpush3.msra.mxu1 %v6313_v19 }
 0x257   :  { %5096 = vmatprep.subr.mxu0 %v7735_v58  ;;  %5145 = vmatprep.subr.mxu1 %v7735_v58 }
 0x258   :  { %5097 = vmatpush3.msra.mxu0 %v6290_v2  ;;  %5146 = vmatpush3.msra.mxu1 %v6327_v27 }
 0x259   :  { %5098 = vmatprep.subr.mxu0 %v7735_v58  ;;  %5147 = vmatprep.subr.mxu1 %v7735_v58 }
 0x25a   :  { %5099 = vmatpush3.msra.mxu0 %v6302_v11  ;;  %5148 = vmatpush3.msra.mxu1 %v6337_v32 }
 0x25b   :  { %5100 = vmatprep.subr.mxu0 %v7735_v58  ;;  %5149 = vmatprep.subr.mxu1 %v7735_v58 }
 0x25c   :  { %5101 = vmatpush3.msra.mxu0 %v6317_v20  ;;  %5150 = vmatpush3.msra.mxu1 %v6352_v46 }
 0x25d   :  { %5080 = vmatmul.mubr.f32.gmra.mxu1 %v6514_v37  ;;  %5102 = vmatprep.subr.mxu0 %v7735_v58 }
 0x25e   :  { %5151 = vmatprep.subr.mxu1 %v7735_v58  ;;  %5103 = vmatpush3.msra.mxu0 %v6325_v26 }
 0x25f   :  { %5152 = vmatpush3.msra.mxu1 %v6365_v62  ;;  %5104 = vmatprep.subr.mxu0 %v7735_v58 }
 0x260   :  { %5153 = vmatprep.subr.mxu1 %v7735_v58  ;;  %5105 = vmatpush3.msra.mxu0 %v7736_v51 }
 0x261   :  { %5154 = vmatpush3.msra.mxu1 %v7737_v10  ;;  %5155 = vmatprep.mubr.msk.f32.mxu1 %vm5947_vm1, %v7735_v58 }
 0x262   :  { %5106 = vmatprep.subr.mxu0 %v7735_v58  ;;  %5156 = vmatmul.mubr.f32.vlgmr.msra.gmra.mxu1 %v828_v7 }
 0x263   :  { %5205 = vmatprep.subr.mxu1 %v7735_v58  ;;  %5107 = vmatpush3.msra.mxu0 %v7738_v1 }
 0x264   :  { %5206 = vmatpush3.msra.mxu1 %v6211_v17  ;;  %5038 = vmatprep.mubr.msk.f32.mxu0 %vm5947_vm1, %v7735_v58  ;;  %v7740_v17 = vld [vmem:[#allocation16_spill] sm:$0xff] }
 0x265   :  { %5108 = vmatprep.subr.mxu0 %v7735_v58  ;;  %5207 = vmatprep.subr.mxu1 %v7735_v58 }
 0x266   :  { %5039 = vmatmul.mubr.f32.gmra.mxu0 %v850_v9  ;;  %5158 = vmatprep.mubr.msk.f32.mxu1 %vm5947_vm1, %v7735_v58 }
 0x267   :  { %5109 = vmatpush3.msra.mxu0 %v7739_v18  ;;  %5208 = vmatpush3.msra.mxu1 %v6216_v23  ;;  %v7742_v23 = vand.u32 4294901760, %v6214_v22  ;;  %v7744_v22 = vand.u32 4294901760, %v6233_v35  ;;  %v7746_v35 = vand.u32 4294901760, %v6258_v50  ;;  %v7751_v50 = vand.u32 4294901760, %v6317_v20 }
 0x268   :  { %5110 = vmatprep.subr.mxu0 %v7735_v58  ;;  %5159 = vmatmul.mubr.f32.gmra.mxu1 %v838_v63 }
 0x269   :  { %5209 = vmatprep.subr.mxu1 %v7735_v58  ;;  %5111 = vmatpush3.msra.mxu0 %v7740_v17 }
 0x26a   :  { %5210 = vmatpush3.msra.mxu1 %v6224_v31  ;;  %5112 = vmatprep.subr.mxu0 %v7735_v58  ;;  %v7743_v31 = vand.u32 4294901760, %v6222_v30  ;;  %v7745_v30 = vand.u32 4294901760, %v6244_v42  ;;  %v7748_v42 = vand.u32 4294901760, %v6275_v60  ;;  %v7754_v60 = vand.u32 4294901760, %v7738_v1 }
 0x26b   :  { %5211 = vmatprep.subr.mxu1 %v7735_v58  ;;  %5113 = vmatpush3.msra.mxu0 %v7741_v56 }
 0x26c   :  { %5114 = vmatprep.mubr.msk.f32.mxu0 %vm5947_vm1, %v7735_v58  ;;  %5212 = vmatpush3.msra.mxu1 %v6235_v36  ;;  %v7747_v36 = vand.u32 4294901760, %v6265_v54  ;;  %v7752_v54 = vand.u32 4294901760, %v6325_v26 }
 0x26d   :  { %5115 = vmatmul.mubr.f32.vlgmr.msra.gmra.mxu0 %v6444_v24  ;;  %5164 = vmatprep.subr.mxu0 %v7735_v58 }
 0x26e   :  { %5213 = vmatprep.subr.mxu1 %v7735_v58  ;;  %5165 = vmatpush3.msra.mxu0 %v7742_v23 }
 0x26f   :  { %5214 = vmatpush3.msra.mxu1 %v6247_v43  ;;  %5166 = vmatprep.subr.mxu0 %v7735_v58  ;;  %v7749_v43 = vand.u32 4294901760, %v6290_v2  ;;  %v7756_v2 = vand.u32 4294901760, %v7740_v17 }
 0x270   :  { %5215 = vmatprep.subr.mxu1 %v7735_v58  ;;  %5117 = vmatprep.mubr.msk.f32.mxu0 %vm5947_vm1, %v7735_v58 }
 0x271   :  { %5167 = vmatpush3.msra.mxu0 %v7743_v31  ;;  %5216 = vmatpush3.msra.mxu1 %v6254_v49  ;;  %v7750_v49 = vand.u32 4294901760, %v6302_v11 }
 0x272   :  { %5118 = vmatmul.mubr.f32.gmra.mxu0 %v6470_v0  ;;  %5168 = vmatprep.subr.mxu0 %v7735_v58 }
 0x273   :  { %5217 = vmatprep.subr.mxu1 %v7735_v58  ;;  %5169 = vmatpush3.msra.mxu0 %v7744_v22 }
 0x274   :  { %5218 = vmatpush3.msra.mxu1 %v6267_v55  ;;  %5170 = vmatprep.subr.mxu0 %v7735_v58  ;;  %v7753_v55 = vand.u32 4294901760, %v7736_v51 }
 0x275   :  { %5219 = vmatprep.subr.mxu1 %v7735_v58  ;;  %5120 = vmatprep.mubr.msk.f32.mxu0 %vm5947_vm1, %v7735_v58 }
 0x276   :  { %5171 = vmatpush3.msra.mxu0 %v7745_v30  ;;  %5220 = vmatpush3.msra.mxu1 %v6277_v61  ;;  %v7755_v61 = vand.u32 4294901760, %v7739_v18 }
 0x277   :  { %5121 = vmatmul.mubr.f32.gmra.mxu0 %v6525_v52  ;;  %5172 = vmatprep.subr.mxu0 %v7735_v58 }
 0x278   :  { %5221 = vmatprep.subr.mxu1 %v7735_v58  ;;  %5161 = vmatprep.mubr.msk.f32.mxu1 %vm5947_vm1, %v7735_v58 }
 0x279   :  { %5173 = vmatpush3.msra.mxu0 %v7746_v35  ;;  %5222 = vmatpush3.msra.mxu1 %v6292_v3  ;;  %v7757_v3 = vand.u32 4294901760, %v7741_v56 }
 0x27a   :  { %5162 = vmatmul.mubr.f32.gmra.mxu1 %v848_v15  ;;  %5174 = vmatprep.subr.mxu0 %v7735_v58 }
 0x27b   :  { %5223 = vmatprep.subr.mxu1 %v7735_v58  ;;  %5175 = vmatpush3.msra.mxu0 %v7747_v36 }
 0x27c   :  { %5224 = vmatpush3.msra.mxu1 %v6305_v12  ;;  %5176 = vmatprep.subr.mxu0 %v7735_v58 }
 0x27d   :  { %5225 = vmatprep.subr.mxu1 %v7735_v58  ;;  %5177 = vmatpush3.msra.mxu0 %v7748_v42 }
 0x27e   :  { %5226 = vmatpush3.msra.mxu1 %v6313_v19  ;;  %5178 = vmatprep.subr.mxu0 %v7735_v58 }
 0x27f   :  { %5227 = vmatprep.subr.mxu1 %v7735_v58  ;;  %5179 = vmatpush3.msra.mxu0 %v7749_v43 }
 0x280   :  { %5228 = vmatpush3.msra.mxu1 %v6327_v27  ;;  %5180 = vmatprep.subr.mxu0 %v7735_v58 }
 0x281   :  { %5229 = vmatprep.subr.mxu1 %v7735_v58  ;;  %5181 = vmatpush3.msra.mxu0 %v7750_v49 }
 0x282   :  { %5230 = vmatpush3.msra.mxu1 %v6337_v32  ;;  %5182 = vmatprep.subr.mxu0 %v7735_v58 }
 0x283   :  { %5231 = vmatprep.subr.mxu1 %v7735_v58  ;;  %5183 = vmatpush3.msra.mxu0 %v7751_v50 }
 0x284   :  { %5232 = vmatpush3.msra.mxu1 %v6352_v46  ;;  %5184 = vmatprep.subr.mxu0 %v7735_v58 }
 0x285   :  { %5233 = vmatprep.subr.mxu1 %v7735_v58  ;;  %5185 = vmatpush3.msra.mxu0 %v7752_v54 }
 0x286   :  { %5234 = vmatpush3.msra.mxu1 %v6365_v62  ;;  %5186 = vmatprep.subr.mxu0 %v7735_v58 }
 0x287   :  { %5235 = vmatprep.subr.mxu1 %v7735_v58  ;;  %5187 = vmatpush3.msra.mxu0 %v7753_v55 }
 0x288   :  { %5236 = vmatpush3.msra.mxu1 %v7737_v10  ;;  %5237 = vmatprep.mubr.msk.f32.mxu1 %vm5947_vm1, %v7735_v58 }
 0x289   :  { %5188 = vmatprep.subr.mxu0 %v7735_v58  ;;  %5238 = vmatmul.mubr.f32.vlgmr.msra.gmra.mxu1 %v6431_v34 }
 0x28a   :  { %5189 = vmatpush3.msra.mxu0 %v7754_v60  ;;  %5240 = vmatprep.mubr.msk.f32.mxu1 %vm5947_vm1, %v7735_v58 }
 0x28b   :  { %5190 = vmatprep.subr.mxu0 %v7735_v58  ;;  %5196 = vmatprep.mubr.msk.f32.mxu0 %vm5947_vm1, %v7735_v58 }
 0x28c   :  { %5191 = vmatpush3.msra.mxu0 %v7755_v61 }
 0x28d   :  { %5192 = vmatprep.subr.mxu0 %v7735_v58  ;;  %5241 = vmatmul.mubr.f32.gmra.mxu1 %v6453_v8 }
 0x28e   :  { %5193 = vmatpush3.msra.mxu0 %v7756_v2  ;;  %5243 = vmatprep.mubr.msk.f32.mxu1 %vm5947_vm1, %v7735_v58  ;;  %v1520_v2 = vpop.permute.xlu1 %1519 }
 0x28f   :  { %5194 = vmatprep.subr.mxu0 %v7735_v58 }
 0x290   :  { %5195 = vmatpush3.msra.mxu0 %v7757_v3 }
 0x291   :  { %5197 = vmatmul.mubr.f32.vlgmr.msra.gmra.mxu0 %v6431_v34  ;;  %5244 = vmatmul.mubr.f32.gmra.mxu1 %v6514_v37 }
 0x292   :  { %5199 = vmatprep.mubr.msk.f32.mxu0 %vm5947_vm1, %v7735_v58 }
 0x295   :  { %5200 = vmatmul.mubr.f32.gmra.mxu0 %v6453_v8 }
 0x296   :  { %5202 = vmatprep.mubr.msk.f32.mxu0 %vm5947_vm1, %v7735_v58 }
 0x299   :  { %5203 = vmatmul.mubr.f32.gmra.mxu0 %v6514_v37 }
 0x300   :  { %v1003_v11 = vpop.f32.mrf.mxu1 }
 0x302   :  { %v5075_v12 = vpop.f32.mrf.mxu1 }
 0x303   :  { %v1518_v12 = vpop.permute.xlu1 %1517 }
 0x304   :  { %v1009_v19 = vpop.f32.mrf.mxu1 }
 0x306   :  { %v5078_v20 = vpop.f32.mrf.mxu1 }
 0x308   :  { %v832_v26 = vpop.f32.mrf.mxu0 }
 0x309   :  { %v1004_v27 = vadd.f32 %v1003_v11, %v832_v26  ;;  %v4584_v26 = vld [vmem:[%s7690_s3] ss:$0 sm:$0xff] }
 0x30a   :  { %v5034_v32 = vpop.f32.mrf.mxu0 }
 0x30b   :  { %v1516_v32 = vpop.permute.xlu1 %1515 }
 0x30d   :  { %v842_v46 = vpop.f32.mrf.mxu0 }
 0x30e   :  { %v1010_v62 = vadd.f32 %v1009_v19, %v842_v46 }
 0x30f   :  { %v5037_v6 = vpop.f32.mrf.mxu0 }
 0x31d   :  { %v1015_v34 = vpop.f32.mrf.mxu1 }
 0x31f   :  { %v5081_v59 = vpop.f32.mrf.mxu1 }
 0x320   :  { %v1522_v59 = vpop.permute.xlu0 %1521 }
 0x322   :  { %v1222_v28 = vpop.f32.mrf.mxu1 }
 0x324   :  { %v5157_v24 = vpop.f32.mrf.mxu1 }
 0x326   :  { %v852_v44 = vpop.f32.mrf.mxu0 }
 0x327   :  { %v1016_v17 = vadd.f32 %v1015_v34, %v852_v44 }
 0x328   :  { %v1230_v57 = vpop.f32.mrf.mxu1  ;;  %v5040_v7 = vpop.f32.mrf.mxu0 }
 0x32a   :  { %v5160_v58 = vpop.f32.mrf.mxu1 }
 0x32b   :  { %v1514_v58 = vpop.permute.xlu0 %1513 }
 0x32d   :  { %v1119_v8 = vpop.f32.mrf.mxu0 }
 0x32e   :  { %v1120_v15 = vadd.f32 %v1119_v8, %v1004_v27 }
 0x32f   :  { %v5116_v38 = vpop.f32.mrf.mxu0 }
 0x330   :  { %v1223_v9 = vadd.f32 %v1222_v28, %v1120_v15 }
 0x332   :  { %v1126_v0 = vpop.f32.mrf.mxu0 }
 0x333   :  { %v1127_v10 = vadd.f32 %v1126_v0, %v1010_v62 }
 0x334   :  { %v5119_v53 = vpop.f32.mrf.mxu0 }
 0x335   :  { %v1231_v35 = vadd.f32 %v1230_v57, %v1127_v10  ;;  %v2174_v53 = vlaneseq }
 0x337   :  { %v1133_v63 = vpop.f32.mrf.mxu0 }
 0x338   :  { %v1134_v22 = vadd.f32 %v1133_v63, %v1016_v17 }
 0x339   :  { %v5122_v13 = vpop.f32.mrf.mxu0 }
 0x33a   :  { %v1238_v14 = vpop.f32.mrf.mxu1 }
 0x33b   :  { %v1239_v50 = vadd.f32 %v1238_v14, %v1134_v22 }
 0x33c   :  { %v5163_v33 = vpop.f32.mrf.mxu1 }
 0x349   :  { %v1456_v37 = vpop.f32.mrf.mxu1 }
 0x34b   :  { %v5239_v52 = vpop.f32.mrf.mxu1 }
 0x34d   :  { %v1462_v4 = vpop.f32.mrf.mxu1 }
 0x34f   :  { %v5242_v51 = vpop.f32.mrf.mxu1 }
 0x350   :  { %v1510_v51 = vpop.permute.xlu0 %1509 }
 0x351   :  { %v1357_v1 = vpop.f32.mrf.mxu0  ;;  %v1468_v18 = vpop.f32.mrf.mxu1 }
 0x352   :  { %v1358_v56 = vadd.f32 %v1357_v1, %v1223_v9 }
 0x353   :  { %v5198_v23 = vpop.f32.mrf.mxu0  ;;  %v5245_v31 = vpop.f32.mrf.mxu1 }
 0x354   :  { %v1457_v30 = vadd.f32 %v1456_v37, %v1358_v56 }
 0x355   :  { %v1363_v36 = vpop.f32.mrf.mxu0 }
 0x356   :  { %v1472_v42 = vmax.f32 %v1457_v30, 1e-24  ;;  %v1364_v43 = vadd.f32 %v1363_v36, %v1231_v35 }
 0x357   :  { %v5201_v49 = vpop.f32.mrf.mxu0 }
 0x358   :  { %5829 = vrsqrt.f32 %v1472_v42  ;;  %v1463_v54 = vadd.f32 %v1462_v4, %v1364_v43  ;;  %v2175_v4 = vshrl.u32 %v2174_v53, 7 }
 0x359   :  { %v1369_v55 = vpop.f32.mrf.mxu0 }
 0x35a   :  { %v1473_v60 = vmax.f32 %v1463_v54, 1e-24  ;;  %v1370_v61 = vadd.f32 %v1369_v55, %v1239_v50  ;;  %v2176_v1 = vsub.s32 0, %v2175_v4 }
 0x35b   :  { %v5204_v3 = vpop.f32.mrf.mxu0 }
 0x35c   :  { %5831 = vrsqrt.f32 %v1473_v60  ;;  %v1469_v11 = vadd.f32 %v1468_v18, %v1370_v61 }
 0x35e   :  { %v1474_v19 = vmax.f32 %v1469_v11, 1e-24 }
 0x360   :  { %5833 = vrsqrt.f32 %v1474_v19 }
 0x365   :  { %v5830_v20 = vpop.eup %5829 }
 0x366   :  { %v1478_v27 = vmul.f32 %v5830_v20, %v6427_v39  ;;  %v1512_v39 = vpop.permute.xlu1 %1511 }
 0x368   :  { %v6685_v46 = vmul.f32 %v4584_v26, %v1478_v27 }
 0x369   :  { %v5832_v62 = vpop.eup %5831 }
 0x36a   :  { %v1479_v6 = vmul.f32 %v5832_v62, %v6433_v40  ;;  %v1537_v34 = vmul.f32 %v1520_v2, %v6685_v46  ;;  %v1573_v28 = vsel %vm1571_vm2, %v6685_v46, 0  ;;  %v1535_v57 = vmul.f32 %v1516_v32, %v6685_v46  ;;  %v1508_v13 = vpop.permute.xlu1 %1507 }
 0x36b   :  { %v6694_v44 = vand.u32 4294901760, %v1573_v28  ;;  %v1533_v0 = vmul.f32 %v1512_v39, %v6685_v46  ;;  %v1531_v37 = vmul.f32 %v1508_v13, %v6685_v46 }
 0x36c   :  { %v6691_v24 = vmul.f32 %v4584_v26, %v1479_v6  ;;  %1567 = vrot.lane.b32.xlu1 %v1537_v34, %s5948_s1 }
 0x36d   :  { %5281 = vmatprep.mubr.f32.mxu1 %v6694_v44  ;;  %v6700_v40 = vsub.f32 %v1573_v28, %v6694_v44  ;;  %v5834_v63 = vpop.eup %5833 }
 0x36e   :  { %v1538_v7 = vmul.f32 %v1522_v59, %v6691_v24  ;;  %v1536_v38 = vmul.f32 %v1518_v12, %v6691_v24  ;;  %v1534_v52 = vmul.f32 %v1514_v58, %v6691_v24  ;;  %v1480_v15 = vmul.f32 %v5834_v63, %v6496_v45 }
 0x36f   :  { %v1669_v8 = vand.u32 4294901760, %v6700_v40  ;;  %v1532_v10 = vmul.f32 %v1510_v51, %v6691_v24  ;;  %v1576_v53 = vsel %vm1571_vm2, %v6691_v24, 0 }
 0x370   :  { %1563 = vrot.lane.b32.xlu1 %v1535_v57, %s5948_s1  ;;  %1569 = vrot.lane.b32.xlu0 %v1538_v7, %s5948_s1  ;;  %v1490_v9 = vmul.f32 %v4584_v26, %v1480_v15 }
 0x371   :  { %v1670_v14 = vsub.f32 %v6700_v40, %v1669_v8 }
 0x372   :  { %v2177_v18 = vrot.slane %v1490_v9, %v2176_v1 }
 0x373   :  { %v1671_v33 = vand.u32 4294901760, %v1670_v14 }
 0x374   :  { %1559 = vrot.lane.b32.xlu1 %v1533_v0, %s5948_s1  ;;  %1565 = vrot.lane.b32.xlu0 %v1536_v38, %s5948_s1 }
 0x375   :  { %5262 = vmatprep.mubr.f32.mxu0 %v1671_v33 }
 0x378   :  { %1555 = vrot.lane.b32.xlu1 %v1531_v37, %s5948_s1  ;;  %1561 = vrot.lane.b32.xlu0 %v1534_v52, %s5948_s1  ;;  %v6794_v37 = vand.u32 4294901760, %v1576_v53 }
 0x37a   :  { %v6807_v9 = vsub.f32 %v1576_v53, %v6794_v37 }
 0x37c   :  { %1557 = vrot.lane.b32.xlu0 %v1532_v10, %s5948_s1 }
 0x380   :  { %2179 = vrot.lane.b32.xlu0 %v2177_v18, %s5948_s1 }
 0x3de   :  { %v1568_v17 = vpop.permute.xlu1 %1567 }
 0x3df   :  { %v1590_v56 = vsel %vm1571_vm2, %v1568_v17, 0 }
 0x3e0   :  { %v6721_v45 = vand.u32 4294901760, %v1590_v56 }
 0x3e2   :  { %v6724_v23 = vsub.f32 %v1590_v56, %v6721_v45  ;;  %v1564_v31 = vpop.permute.xlu1 %1563  ;;  %v1570_v22 = vpop.permute.xlu0 %1569 }
 0x3e3   :  { %v1586_v30 = vsel %vm1571_vm2, %v1564_v31, 0  ;;  %v1592_v35 = vsel %vm1571_vm2, %v1570_v22, 0  ;;  %v1679_v31 = vand.u32 4294901760, %v6807_v9 }
 0x3e4   :  { %v6728_v36 = vand.u32 4294901760, %v1592_v35  ;;  %v6730_v42 = vand.u32 4294901760, %v1586_v30  ;;  %v6737_v50 = vand.u32 4294901760, %v6724_v23 }
 0x3e6   :  { %v6733_v43 = vsub.f32 %v1592_v35, %v6728_v36  ;;  %5246 = vmatprep.subr.mxu0 %v6728_v36  ;;  %v1566_v49 = vpop.permute.xlu0 %1565  ;;  %v1560_v54 = vpop.permute.xlu1 %1559  ;;  %v6748_v2 = vsub.f32 %v1586_v30, %v6730_v42  ;;  %v1714_v20 = vsub.f32 %v6724_v23, %v6737_v50 }
 0x3e7   :  { %v1588_v55 = vsel %vm1571_vm2, %v1566_v49, 0  ;;  %5247 = vmatpush3.xpose.msra.mxu0 %v6728_v36  ;;  %v1582_v3 = vsel %vm1571_vm2, %v1560_v54, 0  ;;  %v1680_v49 = vsub.f32 %v6807_v9, %v1679_v31 }
 0x3e8   :  { %v6741_v60 = vand.u32 4294901760, %v1588_v55  ;;  %5248 = vmatprep.subr.mxu0 %v6721_v45  ;;  %v6745_v61 = vand.u32 4294901760, %v6733_v43  ;;  %v6766_v6 = vand.u32 4294901760, %v1582_v3  ;;  %v1715_v39 = vand.u32 4294901760, %v1714_v20  ;;  %v2187_v20 = vld [vmem:[#allocation5 + $0x18] sm:$0xff] }
 0x3e9   :  { %v6774_v7 = vand.u32 4294901760, %v6748_v2 }
 0x3ea   :  { %v6752_v11 = vsub.f32 %v1588_v55, %v6741_v60  ;;  %v1562_v12 = vpop.permute.xlu0 %1561  ;;  %v1707_v19 = vsub.f32 %v6733_v43, %v6745_v61  ;;  %v1556_v34 = vpop.permute.xlu1 %1555  ;;  %v6780_v38 = vsub.f32 %v1582_v3, %v6766_v6  ;;  %v1681_v3 = vand.u32 4294901760, %v1680_v49 }
 0x3eb   :  { %v1584_v26 = vsel %vm1571_vm2, %v1562_v12, 0  ;;  %5249 = vmatpush3.xpose.msra.mxu0 %v6721_v45  ;;  %v1578_v0 = vsel %vm1571_vm2, %v1556_v34, 0  ;;  %v1728_v14 = vsub.f32 %v6748_v2, %v6774_v7  ;;  %v6922_v34 = vand.u32 4294901760, %v2187_v20 }
 0x3ec   :  { %v6760_v27 = vand.u32 4294901760, %v1584_v26  ;;  %5250 = vmatprep.subr.mxu0 %v6741_v60  ;;  %v1708_v32 = vand.u32 4294901760, %v1707_v19  ;;  %v6764_v62 = vand.u32 4294901760, %v6752_v11  ;;  %v6796_v52 = vand.u32 4294901760, %v1578_v0  ;;  %v2188_v19 = vld [vmem:[#allocation5 + $0x20] sm:$0xff] }
 0x3ed   :  { %v1729_v4 = vand.u32 4294901760, %v1728_v14  ;;  %v6802_v10 = vand.u32 4294901760, %v6780_v38  ;;  %v6948_v14 = vsub.f32 %v2187_v20, %v6922_v34  ;;  %v5851_v20 = vld [vmem:[#allocation7 + $0x18] sm:$0xff] }
 0x3ee   :  { %v6769_v59 = vsub.f32 %v1584_v26, %v6760_v27  ;;  %5265 = vmatprep.subr.mxu1 %v1708_v32  ;;  %v1558_v28 = vpop.permute.xlu0 %1557  ;;  %v1721_v57 = vsub.f32 %v6752_v11, %v6764_v62  ;;  %v1754_v1 = vsub.f32 %v1578_v0, %v6796_v52 }
 0x3ef   :  { %v1580_v58 = vsel %vm1571_vm2, %v1558_v28, 0  ;;  %5251 = vmatpush3.xpose.msra.mxu0 %v6741_v60  ;;  %5266 = vmatpush3.xpose.msra.mxu1 %v1708_v32  ;;  %v1742_v17 = vsub.f32 %v6780_v38, %v6802_v10  ;;  %v6911_v32 = vand.u32 4294901760, %v2188_v19 }
 0x3f0   :  { %5252 = vmatprep.subr.mxu0 %v6730_v42  ;;  %5267 = vmatprep.subr.mxu1 %v1715_v39  ;;  %v6785_v63 = vand.u32 4294901760, %v1580_v58  ;;  %v1722_v13 = vand.u32 4294901760, %v1721_v57  ;;  %v6790_v33 = vand.u32 4294901760, %v6769_v59  ;;  %v6818_v35 = vand.u32 4294901760, %v1754_v1 }
 0x3f1   :  { %v1743_v22 = vand.u32 4294901760, %v1742_v17 }
 0x3f2   :  { %v1747_v15 = vsub.f32 %v1580_v58, %v6785_v63  ;;  %v1735_v51 = vsub.f32 %v6769_v59, %v6790_v33  ;;  %v1756_v55 = vsub.f32 %v1754_v1, %v6818_v35  ;;  %v2185_v58 = vld [vmem:[#allocation5 + $0x8] sm:$0xff] }
 0x3f3   :  { %5253 = vmatpush3.xpose.msra.mxu0 %v6730_v42  ;;  %5268 = vmatpush3.xpose.msra.mxu1 %v1715_v39 }
 0x3f4   :  { %5254 = vmatprep.subr.mxu0 %v6760_v27  ;;  %5269 = vmatprep.subr.mxu1 %v1722_v13  ;;  %v1736_v18 = vand.u32 4294901760, %v1735_v51  ;;  %v6812_v56 = vand.u32 4294901760, %v1747_v15  ;;  %v1757_v12 = vand.u32 4294901760, %v1756_v55 }
 0x3f6   :  { %v1749_v30 = vsub.f32 %v1747_v15, %v6812_v56 }
 0x3f7   :  { %5255 = vmatpush3.xpose.msra.mxu0 %v6760_v27  ;;  %5270 = vmatpush3.xpose.msra.mxu1 %v1722_v13  ;;  %v2184_v13 = vld [vmem:[#allocation5] sm:$0xff] }
 0x3f8   :  { %5256 = vmatprep.subr.mxu0 %v6766_v6  ;;  %5271 = vmatprep.subr.mxu1 %v1729_v4  ;;  %v1750_v54 = vand.u32 4294901760, %v1749_v30 }
 0x3fb   :  { %5257 = vmatpush3.xpose.msra.mxu0 %v6766_v6  ;;  %5272 = vmatpush3.xpose.msra.mxu1 %v1729_v4 }
 0x3fc   :  { %5258 = vmatprep.subr.mxu0 %v6785_v63  ;;  %5273 = vmatprep.subr.mxu1 %v1736_v18 }
 0x3ff   :  { %5259 = vmatpush3.xpose.msra.mxu0 %v6785_v63  ;;  %5274 = vmatpush3.xpose.msra.mxu1 %v1736_v18  ;;  %v6973_v18 = vand.u32 4294901760, %v6948_v14 }
 0x400   :  { %5260 = vmatprep.subr.mxu0 %v6796_v52  ;;  %5275 = vmatprep.subr.mxu1 %v1743_v22 }
 0x401   :  { %v2339_v49 = vsub.f32 %v6948_v14, %v6973_v18 }
 0x403   :  { %5261 = vmatpush3.xpose.msra.mxu0 %v6796_v52  ;;  %5276 = vmatpush3.xpose.msra.mxu1 %v1743_v22 }
 0x404   :  { %5277 = vmatprep.subr.mxu1 %v1750_v54  ;;  %5284 = vmatprep.subr.mxu0 %v6733_v43 }
 0x406   :  { %5263 = vmatmul.mubr.f32.vlgmr.msra.gmra.mxu0 %v1681_v3 }
 0x407   :  { %5278 = vmatpush3.xpose.msra.mxu1 %v1750_v54  ;;  %5285 = vmatpush3.xpose.msra.mxu0 %v6733_v43 }
 0x408   :  { %5300 = vmatprep.mubr.f32.mxu0 %v6700_v40  ;;  %5279 = vmatprep.subr.mxu1 %v1757_v12  ;;  %v2180_v40 = vpop.permute.xlu0 %2179 }
 0x409   :  { %5286 = vmatprep.subr.mxu0 %v6724_v23 }
 0x40b   :  { %5280 = vmatpush3.xpose.msra.mxu1 %v1757_v12  ;;  %5287 = vmatpush3.xpose.msra.mxu0 %v6724_v23 }
 0x40c   :  { %5288 = vmatprep.subr.mxu0 %v6752_v11  ;;  %5303 = vmatprep.subr.mxu1 %v6728_v36 }
 0x40e   :  { %5282 = vmatmul.mubr.f32.vlgmr.msra.gmra.mxu1 %v6794_v37 }
 0x40f   :  { %5289 = vmatpush3.xpose.msra.mxu0 %v6752_v11  ;;  %5304 = vmatpush3.xpose.msra.mxu1 %v6728_v36 }
 0x410   :  { %5319 = vmatprep.mubr.f32.mxu1 %v1669_v8  ;;  %5290 = vmatprep.subr.mxu0 %v6748_v2  ;;  %v2182_v8 = vmul.f32 %v2180_v40, %v6685_v46  ;;  %v2191_v46 = vld [vmem:[#allocation5 + $0x38] sm:$0xff] }
 0x411   :  { %5305 = vmatprep.subr.mxu1 %v6721_v45 }
 0x412   :  { %v2193_v23 = vsel %vm1571_vm2, %v2182_v8, 0 }
 0x413   :  { %5291 = vmatpush3.xpose.msra.mxu0 %v6748_v2  ;;  %5306 = vmatpush3.xpose.msra.mxu1 %v6721_v45  ;;  %v6880_v43 = vand.u32 4294901760, %v2193_v23  ;;  %v2183_v2 = vmul.f32 %v2180_v40, %v6691_v24  ;;  %v2340_v40 = vand.u32 4294901760, %v2339_v49 }
 0x414   :  { %5292 = vmatprep.subr.mxu0 %v6769_v59  ;;  %5307 = vmatprep.subr.mxu1 %v6741_v60 }
 0x417   :  { %5293 = vmatpush3.xpose.msra.mxu0 %v6769_v59  ;;  %5308 = vmatpush3.xpose.msra.mxu1 %v6741_v60  ;;  %v2186_v59 = vld [vmem:[#allocation5 + $0x10] sm:$0xff] }
 0x418   :  { %5294 = vmatprep.subr.mxu0 %v6780_v38  ;;  %5309 = vmatprep.subr.mxu1 %v6730_v42  ;;  %v6940_v0 = vand.u32 4294901760, %v2186_v59 }
 0x41b   :  { %5295 = vmatpush3.xpose.msra.mxu0 %v6780_v38  ;;  %5310 = vmatpush3.xpose.msra.mxu1 %v6730_v42 }
 0x41c   :  { %5296 = vmatprep.subr.mxu0 %v1747_v15  ;;  %5311 = vmatprep.subr.mxu1 %v6760_v27 }
 0x41f   :  { %5297 = vmatpush3.xpose.msra.mxu0 %v1747_v15  ;;  %5312 = vmatpush3.xpose.msra.mxu1 %v6760_v27  ;;  %v6951_v15 = vand.u32 4294901760, %v2185_v58 }
 0x420   :  { %5298 = vmatprep.subr.mxu0 %v1754_v1  ;;  %5313 = vmatprep.subr.mxu1 %v6766_v6 }
 0x421   :  { %v6977_v17 = vsub.f32 %v2185_v58, %v6951_v15 }
 0x423   :  { %5299 = vmatpush3.xpose.msra.mxu0 %v1754_v1  ;;  %5314 = vmatpush3.xpose.msra.mxu1 %v6766_v6  ;;  %v6997_v54 = vand.u32 4294901760, %v6977_v17 }
 0x424   :  { %5315 = vmatprep.subr.mxu1 %v6785_v63  ;;  %5322 = vmatprep.subr.mxu0 %v6745_v61 }
 0x425   :  { %v2353_v8 = vsub.f32 %v6977_v17, %v6997_v54 }
 0x426   :  { %5301 = vmatmul.mubr.f32.vlgmr.msra.gmra.mxu0 %v6807_v9  ;;  %v6966_v9 = vsub.f32 %v2186_v59, %v6940_v0 }
 0x427   :  { %5316 = vmatpush3.xpose.msra.mxu1 %v6785_v63  ;;  %5323 = vmatpush3.xpose.msra.mxu0 %v6745_v61 }
 0x428   :  { %5338 = vmatprep.mubr.f32.mxu0 %v6694_v44  ;;  %5317 = vmatprep.subr.mxu1 %v6796_v52  ;;  %v6986_v22 = vand.u32 4294901760, %v6966_v9 }
 0x429   :  { %5324 = vmatprep.subr.mxu0 %v6737_v50 }
 0x42a   :  { %v2346_v3 = vsub.f32 %v6966_v9, %v6986_v22 }
 0x42b   :  { %5318 = vmatpush3.xpose.msra.mxu1 %v6796_v52  ;;  %5325 = vmatpush3.xpose.msra.mxu0 %v6737_v50  ;;  %v2189_v50 = vld [vmem:[#allocation5 + $0x28] sm:$0xff] }
 0x42c   :  { %5326 = vmatprep.subr.mxu0 %v6764_v62  ;;  %5341 = vmatprep.subr.mxu1 %v6728_v36 }
 0x42e   :  { %5320 = vmatmul.mubr.f32.vlgmr.msra.gmra.mxu1 %v1679_v31 }
 0x42f   :  { %5327 = vmatpush3.xpose.msra.mxu0 %v6764_v62  ;;  %5342 = vmatpush3.xpose.msra.mxu1 %v6728_v36  ;;  %v6889_v36 = vsub.f32 %v2193_v23, %v6880_v43  ;;  %v2196_v62 = vsel %vm1571_vm2, %v2183_v2, 0 }
 0x430   :  { %5357 = vmatprep.mubr.f32.mxu1 %v6694_v44  ;;  %5328 = vmatprep.subr.mxu0 %v6774_v7  ;;  %v6886_v44 = vand.u32 4294901760, %v2191_v46  ;;  %v6931_v57 = vand.u32 4294901760, %v2196_v62 }
 0x431   :  { %5343 = vmatprep.subr.mxu1 %v6721_v45  ;;  %v2273_v11 = vand.u32 4294901760, %v6889_v36 }
 0x432   :  { %v6954_v4 = vsub.f32 %v2196_v62, %v6931_v57  ;;  %v5853_v62 = vld [vmem:[#allocation7 + $0x8] sm:$0xff] }
 0x433   :  { %5329 = vmatpush3.xpose.msra.mxu0 %v6774_v7  ;;  %5344 = vmatpush3.xpose.msra.mxu1 %v6721_v45  ;;  %v2190_v45 = vld [vmem:[#allocation5 + $0x30] sm:$0xff] }
 0x434   :  { %5330 = vmatprep.subr.mxu0 %v6790_v33  ;;  %5345 = vmatprep.subr.mxu1 %v6741_v60  ;;  %v6898_v61 = vand.u32 4294901760, %v2190_v45 }
 0x436   :  { %v6914_v24 = vsub.f32 %v2190_v45, %v6898_v61 }
 0x437   :  { %5331 = vmatpush3.xpose.msra.mxu0 %v6790_v33  ;;  %5346 = vmatpush3.xpose.msra.mxu1 %v6741_v60  ;;  %v6896_v60 = vsub.f32 %v2191_v46, %v6886_v44  ;;  %v2347_v46 = vand.u32 4294901760, %v2346_v3 }
 0x438   :  { %5332 = vmatprep.subr.mxu0 %v6802_v10  ;;  %5347 = vmatprep.subr.mxu1 %v6730_v42  ;;  %v6934_v7 = vand.u32 4294901760, %v6914_v24 }
 0x439   :  { %v6909_v26 = vand.u32 4294901760, %v6896_v60 }
 0x43b   :  { %5333 = vmatpush3.xpose.msra.mxu0 %v6802_v10  ;;  %5348 = vmatpush3.xpose.msra.mxu1 %v6730_v42  ;;  %v6904_v42 = vand.u32 4294901760, %v2189_v50  ;;  %v2311_v39 = vsub.f32 %v6896_v60, %v6909_v26  ;;  %v6963_v10 = vand.u32 4294901760, %v2184_v13 }
 0x43c   :  { %5334 = vmatprep.subr.mxu0 %v6812_v56  ;;  %5349 = vmatprep.subr.mxu1 %v6760_v27 }
 0x43d   :  { %v6925_v28 = vsub.f32 %v2189_v50, %v6904_v42  ;;  %v2312_v33 = vand.u32 4294901760, %v2311_v39  ;;  %v6989_v30 = vsub.f32 %v2184_v13, %v6963_v10  ;;  %v2354_v50 = vand.u32 4294901760, %v2353_v8 }
 0x43f   :  { %5335 = vmatpush3.xpose.msra.mxu0 %v6812_v56  ;;  %5350 = vmatpush3.xpose.msra.mxu1 %v6760_v27  ;;  %v2274_v27 = vsub.f32 %v6889_v36, %v2273_v11  ;;  %v6945_v53 = vand.u32 4294901760, %v6925_v28  ;;  %v2283_v56 = vand.u32 4294901760, %v6954_v4  ;;  %v7007_v12 = vand.u32 4294901760, %v6989_v30 }
 0x440   :  { %5336 = vmatprep.subr.mxu0 %v6818_v35  ;;  %5351 = vmatprep.subr.mxu1 %v6766_v6 }
 0x441   :  { %v2275_v38 = vand.u32 4294901760, %v2274_v27  ;;  %v2325_v1 = vsub.f32 %v6925_v28, %v6945_v53  ;;  %v2284_v55 = vsub.f32 %v6954_v4, %v2283_v56  ;;  %v2360_v45 = vsub.f32 %v6989_v30, %v7007_v12 }
 0x442   :  { %v7114_v27 = vand.u32 4294901760, %v5853_v62 }
 0x443   :  { %5337 = vmatpush3.xpose.msra.mxu0 %v6818_v35  ;;  %5352 = vmatpush3.xpose.msra.mxu1 %v6766_v6  ;;  %v6937_v6 = vsub.f32 %v2188_v19, %v6911_v32  ;;  %v2326_v35 = vand.u32 4294901760, %v2325_v1  ;;  %v2285_v23 = vand.u32 4294901760, %v2284_v55  ;;  %v2361_v2 = vand.u32 4294901760, %v2360_v45  ;;  %v5850_v19 = vld [vmem:[#allocation7 + $0x20] sm:$0xff] }
 0x444   :  { %5353 = vmatprep.subr.mxu1 %v6785_v63  ;;  %5360 = vmatprep.subr.mxu0 %v6886_v44 }
 0x445   :  { %v6960_v51 = vand.u32 4294901760, %v6937_v6 }
 0x446   :  { %5339 = vmatmul.mubr.f32.vlgmr.msra.gmra.mxu0 %v6794_v37 }
 0x447   :  { %5354 = vmatpush3.xpose.msra.mxu1 %v6785_v63  ;;  %5361 = vmatpush3.msra.mxu0 %v6886_v44  ;;  %v2318_v63 = vsub.f32 %v6914_v24, %v6934_v7 }
 0x448   :  { %5376 = vmatprep.mubr.f32.mxu0 %v2275_v38  ;;  %5355 = vmatprep.subr.mxu1 %v6796_v52 }
 0x449   :  { %5362 = vmatprep.subr.mxu0 %v6898_v61  ;;  %v2319_v31 = vand.u32 4294901760, %v2318_v63 }
 0x44a   :  { %5363 = vmatpush3.msra.mxu0 %v6898_v61 }
 0x44b   :  { %5364 = vmatprep.subr.mxu0 %v6904_v42  ;;  %5356 = vmatpush3.xpose.msra.mxu1 %v6796_v52  ;;  %v2332_v52 = vsub.f32 %v6937_v6, %v6960_v51 }
 0x44c   :  { %5365 = vmatpush3.msra.mxu0 %v6904_v42  ;;  %5379 = vmatprep.subr.mxu1 %v2312_v33 }
 0x44d   :  { %5366 = vmatprep.subr.mxu0 %v6911_v32 }
 0x44e   :  { %5367 = vmatpush3.msra.mxu0 %v6911_v32  ;;  %5358 = vmatmul.mubr.f32.vlgmr.msra.gmra.mxu1 %v6794_v37  ;;  %v2333_v37 = vand.u32 4294901760, %v2332_v52 }
 0x44f   :  { %5368 = vmatprep.subr.mxu0 %v6922_v34  ;;  %5380 = vmatpush3.msra.mxu1 %v2312_v33 }
 0x450   :  { %5369 = vmatpush3.msra.mxu0 %v6922_v34  ;;  %5395 = vmatprep.mubr.f32.mxu1 %v6880_v43 }
 0x451   :  { %5370 = vmatprep.subr.mxu0 %v6940_v0  ;;  %5381 = vmatprep.subr.mxu1 %v2319_v31 }
 0x452   :  { %5371 = vmatpush3.msra.mxu0 %v6940_v0  ;;  %5382 = vmatpush3.msra.mxu1 %v2319_v31 }
 0x453   :  { %5372 = vmatprep.subr.mxu0 %v6951_v15  ;;  %5383 = vmatprep.subr.mxu1 %v2326_v35 }
 0x454   :  { %5373 = vmatpush3.msra.mxu0 %v6951_v15  ;;  %5384 = vmatpush3.msra.mxu1 %v2326_v35 }
 0x455   :  { %5374 = vmatprep.subr.mxu0 %v6963_v10  ;;  %5385 = vmatprep.subr.mxu1 %v2333_v37 }
 0x456   :  { %5375 = vmatpush3.msra.mxu0 %v6963_v10  ;;  %5386 = vmatpush3.msra.mxu1 %v2333_v37 }
 0x457   :  { %5377 = vmatmul.mubr.f32.vlgmr.msra.gmra.mxu0 %v2285_v23  ;;  %5387 = vmatprep.subr.mxu1 %v2340_v40 }
 0x458   :  { %5398 = vmatprep.subr.mxu0 %v6896_v60  ;;  %5388 = vmatpush3.msra.mxu1 %v2340_v40 }
 0x459   :  { %5399 = vmatpush3.msra.mxu0 %v6896_v60  ;;  %5414 = vmatprep.mubr.f32.mxu0 %v6889_v36  ;;  %v5848_v36 = vld [vmem:[#allocation7 + $0x30] sm:$0xff] }
 0x45a   :  { %5389 = vmatprep.subr.mxu1 %v2347_v46  ;;  %5400 = vmatprep.subr.mxu0 %v6914_v24  ;;  %v7086_v60 = vand.u32 4294901760, %v5848_v36 }
 0x45b   :  { %5390 = vmatpush3.msra.mxu1 %v2347_v46  ;;  %5401 = vmatpush3.msra.mxu0 %v6914_v24 }
 0x45c   :  { %5391 = vmatprep.subr.mxu1 %v2354_v50  ;;  %5402 = vmatprep.subr.mxu0 %v6925_v28  ;;  %v7129_v39 = vsub.f32 %v5848_v36, %v7086_v60 }
 0x45d   :  { %5392 = vmatpush3.msra.mxu1 %v2354_v50  ;;  %5403 = vmatpush3.msra.mxu0 %v6925_v28 }
 0x45e   :  { %5393 = vmatprep.subr.mxu1 %v2361_v2  ;;  %5404 = vmatprep.subr.mxu0 %v6937_v6  ;;  %v7143_v38 = vand.u32 4294901760, %v7129_v39 }
 0x45f   :  { %5394 = vmatpush3.msra.mxu1 %v2361_v2  ;;  %5405 = vmatpush3.msra.mxu0 %v6937_v6 }
 0x460   :  { %5396 = vmatmul.mubr.f32.vlgmr.msra.gmra.mxu1 %v6931_v57  ;;  %5406 = vmatprep.subr.mxu0 %v6948_v14  ;;  %v2916_v13 = vsub.f32 %v7129_v39, %v7143_v38 }
 0x461   :  { %5417 = vmatprep.subr.mxu1 %v6886_v44  ;;  %5407 = vmatpush3.msra.mxu0 %v6948_v14 }
 0x462   :  { %5418 = vmatpush3.msra.mxu1 %v6886_v44  ;;  %5433 = vmatprep.mubr.f32.mxu1 %v2273_v11 }
 0x463   :  { %5408 = vmatprep.subr.mxu0 %v6966_v9  ;;  %5419 = vmatprep.subr.mxu1 %v6898_v61 }
 0x464   :  { %5409 = vmatpush3.msra.mxu0 %v6966_v9  ;;  %5420 = vmatpush3.msra.mxu1 %v6898_v61 }
 0x465   :  { %5410 = vmatprep.subr.mxu0 %v6977_v17  ;;  %5421 = vmatprep.subr.mxu1 %v6904_v42 }
 0x466   :  { %5411 = vmatpush3.msra.mxu0 %v6977_v17  ;;  %5422 = vmatpush3.msra.mxu1 %v6904_v42 }
 0x467   :  { %5412 = vmatprep.subr.mxu0 %v6989_v30  ;;  %5423 = vmatprep.subr.mxu1 %v6911_v32 }
 0x468   :  { %5413 = vmatpush3.msra.mxu0 %v6989_v30  ;;  %5424 = vmatpush3.msra.mxu1 %v6911_v32 }
 0x469   :  { %5415 = vmatmul.mubr.f32.vlgmr.msra.gmra.mxu0 %v6954_v4  ;;  %5425 = vmatprep.subr.mxu1 %v6922_v34 }
 0x46a   :  { %5436 = vmatprep.subr.mxu0 %v6909_v26  ;;  %5426 = vmatpush3.msra.mxu1 %v6922_v34 }
 0x46b   :  { %5437 = vmatpush3.msra.mxu0 %v6909_v26  ;;  %5452 = vmatprep.mubr.f32.mxu0 %v6880_v43  ;;  %v7104_v26 = vand.u32 4294901760, %v5851_v20 }
 0x46c   :  { %5427 = vmatprep.subr.mxu1 %v6940_v0  ;;  %5438 = vmatprep.subr.mxu0 %v6934_v7 }
 0x46d   :  { %5428 = vmatpush3.msra.mxu1 %v6940_v0  ;;  %5439 = vmatpush3.msra.mxu0 %v6934_v7 }
 0x46e   :  { %5429 = vmatprep.subr.mxu1 %v6951_v15  ;;  %5440 = vmatprep.subr.mxu0 %v6945_v53 }
 0x46f   :  { %5430 = vmatpush3.msra.mxu1 %v6951_v15  ;;  %5441 = vmatpush3.msra.mxu0 %v6945_v53 }
 0x470   :  { %5431 = vmatprep.subr.mxu1 %v6963_v10  ;;  %5442 = vmatprep.subr.mxu0 %v6960_v51 }
 0x471   :  { %5432 = vmatpush3.msra.mxu1 %v6963_v10  ;;  %5443 = vmatpush3.msra.mxu0 %v6960_v51  ;;  %v7162_v51 = vsub.f32 %v5853_v62, %v7114_v27 }
 0x472   :  { %5434 = vmatmul.mubr.f32.vlgmr.msra.gmra.mxu1 %v2283_v56  ;;  %5444 = vmatprep.subr.mxu0 %v6973_v18 }
 0x473   :  { %5455 = vmatprep.subr.mxu1 %v6886_v44  ;;  %5445 = vmatpush3.msra.mxu0 %v6973_v18  ;;  %v7180_v30 = vand.u32 4294901760, %v7162_v51 }
 0x474   :  { %5456 = vmatpush3.msra.mxu1 %v6886_v44  ;;  %5471 = vmatprep.mubr.f32.mxu1 %v6880_v43  ;;  %v5847_v43 = vld [vmem:[#allocation7 + $0x38] sm:$0xff] }
 0x475   :  { %5446 = vmatprep.subr.mxu0 %v6986_v22  ;;  %5457 = vmatprep.subr.mxu1 %v6898_v61  ;;  %v7080_v44 = vand.u32 4294901760, %v5847_v43  ;;  %v2951_v49 = vsub.f32 %v7162_v51, %v7180_v30 }
 0x476   :  { %5447 = vmatpush3.msra.mxu0 %v6986_v22  ;;  %5458 = vmatpush3.msra.mxu1 %v6898_v61  ;;  %v5849_v61 = vld [vmem:[#allocation7 + $0x28] sm:$0xff] }
 0x477   :  { %5448 = vmatprep.subr.mxu0 %v6997_v54  ;;  %5459 = vmatprep.subr.mxu1 %v6904_v42  ;;  %v7092_v11 = vand.u32 4294901760, %v5849_v61  ;;  %v7123_v28 = vsub.f32 %v5847_v43, %v7080_v44  ;;  %v2952_v37 = vand.u32 4294901760, %v2951_v49 }
 0x478   :  { %5449 = vmatpush3.msra.mxu0 %v6997_v54  ;;  %5460 = vmatpush3.msra.mxu1 %v6904_v42  ;;  %v7098_v42 = vand.u32 4294901760, %v5850_v19 }
 0x479   :  { %5450 = vmatprep.subr.mxu0 %v7007_v12  ;;  %5461 = vmatprep.subr.mxu1 %v6911_v32  ;;  %v7135_v7 = vand.u32 4294901760, %v7123_v28 }
 0x47a   :  { %5451 = vmatpush3.msra.mxu0 %v7007_v12  ;;  %5462 = vmatpush3.msra.mxu1 %v6911_v32  ;;  %v5852_v32 = vld [vmem:[#allocation7 + $0x10] sm:$0xff]  ;;  %v7138_v58 = vsub.f32 %v5850_v19, %v7098_v42 }
 0x47b   :  { %5453 = vmatmul.mubr.f32.vlgmr.msra.gmra.mxu0 %v6931_v57  ;;  %5463 = vmatprep.subr.mxu1 %v6922_v34  ;;  %v7110_v24 = vand.u32 4294901760, %v5852_v32  ;;  %v2909_v6 = vsub.f32 %v7123_v28, %v7135_v7 }
 0x47c   :  { %5464 = vmatpush3.msra.mxu1 %v6922_v34  ;;  %5474 = vmatprep.subr.mxu0 %v7080_v44  ;;  %v5854_v34 = vld [vmem:[#allocation7] sm:$0xff]  ;;  %v7159_v63 = vand.u32 4294901760, %v7138_v58 }
 0x47d   :  { %5465 = vmatprep.subr.mxu1 %v6940_v0  ;;  %5475 = vmatpush3.msra.mxu0 %v7080_v44  ;;  %v7118_v59 = vand.u32 4294901760, %v5854_v34  ;;  %v2910_v53 = vand.u32 4294901760, %v2909_v6  ;;  %v7154_v33 = vsub.f32 %v5852_v32, %v7110_v24 }
 0x47e   :  { %5466 = vmatpush3.msra.mxu1 %v6940_v0  ;;  %5476 = vmatprep.subr.mxu0 %v7086_v60  ;;  %v7146_v0 = vsub.f32 %v5851_v20, %v7104_v26  ;;  %v2930_v9 = vsub.f32 %v7138_v58, %v7159_v63 }
 0x47f   :  { %5467 = vmatprep.subr.mxu1 %v6951_v15  ;;  %5477 = vmatpush3.msra.mxu0 %v7086_v60  ;;  %v7170_v18 = vsub.f32 %v5854_v34, %v7118_v59  ;;  %v7175_v31 = vand.u32 4294901760, %v7154_v33 }
 0x480   :  { %5468 = vmatpush3.msra.mxu1 %v6951_v15  ;;  %5478 = vmatprep.subr.mxu0 %v7092_v11  ;;  %v2917_v15 = vand.u32 4294901760, %v2916_v13  ;;  %v7167_v1 = vand.u32 4294901760, %v7146_v0  ;;  %v2931_v17 = vand.u32 4294901760, %v2930_v9 }
 0x481   :  { %5469 = vmatprep.subr.mxu1 %v6963_v10  ;;  %5479 = vmatpush3.msra.mxu0 %v7092_v11  ;;  %v2944_v22 = vsub.f32 %v7154_v33, %v7175_v31  ;;  %v7185_v54 = vand.u32 4294901760, %v7170_v18 }
 0x482   :  { %5470 = vmatpush3.msra.mxu1 %v6963_v10  ;;  %5480 = vmatprep.subr.mxu0 %v7098_v42  ;;  %v2937_v56 = vsub.f32 %v7146_v0, %v7167_v1 }
 0x483   :  { %5472 = vmatmul.mubr.f32.vlgmr.msra.gmra.mxu1 %v6931_v57  ;;  %5481 = vmatpush3.msra.mxu0 %v7098_v42  ;;  %v7132_v57 = vsub.f32 %v5849_v61, %v7092_v11  ;;  %v2945_v35 = vand.u32 4294901760, %v2944_v22  ;;  %v2958_v55 = vsub.f32 %v7170_v18, %v7185_v54  ;;  %v2782_v22 = vld [vmem:[%s7696_s9] sm:$0xff] }
 0x484   :  { %5482 = vmatprep.subr.mxu0 %v7104_v26  ;;  %5493 = vmatprep.subr.mxu1 %v2910_v53  ;;  %v2938_v52 = vand.u32 4294901760, %v2937_v56  ;;  %v2783_v56 = vld [vmem:[%s7696_s9 + $0x8] sm:$0xff] }
 0x485   :  { %5483 = vmatpush3.msra.mxu0 %v7104_v26  ;;  %v7151_v14 = vand.u32 4294901760, %v7132_v57  ;;  %5494 = vmatpush3.msra.mxu1 %v2910_v53  ;;  %v2959_v3 = vand.u32 4294901760, %v2958_v55 }
 0x486   :  { %5484 = vmatprep.subr.mxu0 %v7110_v24  ;;  %5495 = vmatprep.subr.mxu1 %v2917_v15 }
 0x487   :  { %5485 = vmatpush3.msra.mxu0 %v7110_v24  ;;  %v2923_v4 = vsub.f32 %v7132_v57, %v7151_v14  ;;  %5496 = vmatpush3.msra.mxu1 %v2917_v15 }
 0x488   :  { %5486 = vmatprep.subr.mxu0 %v7114_v27 }
 0x489   :  { %5487 = vmatpush3.msra.mxu0 %v7114_v27  ;;  %v2924_v10 = vand.u32 4294901760, %v2923_v4 }
 0x48a   :  { %5488 = vmatprep.subr.mxu0 %v7118_v59 }
 0x48b   :  { %5489 = vmatpush3.msra.mxu0 %v7118_v59  ;;  %5497 = vmatprep.subr.mxu1 %v2924_v10 }
 0x48c   :  { %5512 = vmatprep.subr.mxu0 %v7123_v28  ;;  %5498 = vmatpush3.msra.mxu1 %v2924_v10 }
 0x48d   :  { %5499 = vmatprep.subr.mxu1 %v2931_v17 }
 0x48e   :  { %5500 = vmatpush3.msra.mxu1 %v2931_v17 }
 0x48f   :  { %5501 = vmatprep.subr.mxu1 %v2938_v52 }
 0x490   :  { %5502 = vmatpush3.msra.mxu1 %v2938_v52 }
 0x491   :  { %5503 = vmatprep.subr.mxu1 %v2945_v35 }
 0x492   :  { %5504 = vmatpush3.msra.mxu1 %v2945_v35 }
 0x493   :  { %5505 = vmatprep.subr.mxu1 %v2952_v37 }
 0x494   :  { %5506 = vmatpush3.msra.mxu1 %v2952_v37 }
 0x495   :  { %5507 = vmatprep.subr.mxu1 %v2959_v3 }
 0x496   :  { %5508 = vmatpush3.msra.mxu1 %v2959_v3 }
 0x497   :  { %5531 = vmatprep.subr.mxu1 %v7080_v44 }
 0x4c6   :  { %v5264_v12 = vpop.f32.mrf.mxu0 }
 0x4c8   :  { %v1673_v40 = vpop.f32.mrf.mxu0 }
 0x4ce   :  { %v5283_v8 = vpop.f32.mrf.mxu1 }
 0x4cf   :  { %v1801_v2 = vadd.f32 %v5283_v8, %v5264_v12 }
 0x4d0   :  { %v1794_v46 = vpop.f32.mrf.mxu1 }
 0x4d1   :  { %v1795_v36 = vadd.f32 %v1794_v46, %v1673_v40 }
 0x4e6   :  { %v5302_v23 = vpop.f32.mrf.mxu0 }
 0x4e7   :  { %v1896_v61 = vadd.f32 %v5302_v23, %v1801_v2 }
 0x4e8   :  { %v1888_v45 = vpop.f32.mrf.mxu0 }
 0x4e9   :  { %v1889_v20 = vadd.f32 %v1888_v45, %v1795_v36 }
 0x4ee   :  { %v5321_v50 = vpop.f32.mrf.mxu1 }
 0x4ef   :  { %v1985_v32 = vadd.f32 %v5321_v50, %v1896_v61 }
 0x4f0   :  { %v1976_v19 = vpop.f32.mrf.mxu1 }
 0x4f1   :  { %v1977_v34 = vadd.f32 %v1976_v19, %v1889_v20 }
 0x506   :  { %v5340_v43 = vpop.f32.mrf.mxu0 }
 0x507   :  { %v2086_v6 = vadd.f32 %v5340_v43, %v1985_v32 }
 0x508   :  { %v2079_v62 = vpop.f32.mrf.mxu0 }
 0x509   :  { %v2080_v13 = vadd.f32 %v2079_v62, %v1977_v34 }
 0x50e   :  { %v5359_v53 = vpop.f32.mrf.mxu1 }
 0x50f   :  { %v2171_v15 = vadd.f32 %v5359_v53, %v2086_v6 }
 0x510   :  { %v2164_v4 = vpop.f32.mrf.mxu1 }
 0x511   :  { %v2780_v10 = vmul.f32 1.442695, %v2171_v15  ;;  %v2165_v9 = vadd.f32 %v2164_v4, %v2080_v13  ;;  %v3976_v13 = vld [vmem:[%s7697_s10 + $0x38] sm:$0xff]  ;;  %v3975_v4 = vld [vmem:[%s7697_s10 + $0x30] sm:$0xff] }
 0x512   :  { %v7487_v15 = vand.u32 4294901760, %v3976_v13 }
 0x513   :  { %5835 = vpow2.f32 %v2780_v10  ;;  %v2778_v17 = vmul.f32 1.442695, %v2165_v9  ;;  %v7495_v9 = vand.u32 4294901760, %v3975_v4 }
 0x514   :  { %v7493_v10 = vsub.f32 %v3976_v13, %v7487_v15 }
 0x515   :  { %5837 = vpow2.f32 %v2778_v17  ;;  %v3974_v17 = vld [vmem:[%s7697_s10 + $0x28] sm:$0xff] }
 0x520   :  { %v5836_v52 = vpop.eup %5835 }
 0x521   :  { %v2785_v35 = vmul.f32 %v5836_v52, %v2783_v56  ;;  %v7503_v56 = vand.u32 4294901760, %v7493_v10  ;;  %v7506_v52 = vsub.f32 %v3975_v4, %v7495_v9 }
 0x522   :  { %v5838_v49 = vpop.eup %5837 }
 0x523   :  { %v2794_v37 = vsel %vm1571_vm2, %v2785_v35, 0  ;;  %v2784_v55 = vmul.f32 %v5838_v49, %v2782_v22  ;;  %v7508_v22 = vand.u32 4294901760, %v3974_v17  ;;  %v3973_v35 = vld [vmem:[%s7697_s10 + $0x20] sm:$0xff]  ;;  %v4096_v49 = vsub.f32 %v7493_v10, %v7503_v56 }
 0x524   :  { %v7197_v3 = vand.u32 4294901760, %v2794_v37 }
 0x525   :  { %v2791_v12 = vsel %vm1571_vm2, %v2784_v55, 0  ;;  %v7521_v55 = vsub.f32 %v3974_v17, %v7508_v22 }
 0x526   :  { %v7200_v40 = vand.u32 4294901760, %v2791_v12  ;;  %v7203_v8 = vsub.f32 %v2794_v37, %v7197_v3  ;;  %v7518_v37 = vand.u32 4294901760, %v7506_v52 }
 0x528   :  { %5509 = vmatprep.mubr.f32.mxu1 %v7200_v40  ;;  %v7207_v23 = vsub.f32 %v2791_v12, %v7200_v40  ;;  %v7210_v46 = vand.u32 4294901760, %v7203_v8  ;;  %v3972_v12 = vld [vmem:[%s7697_s10 + $0x18] sm:$0xff] }
 0x529   :  { %5510 = vmatmul.mubr.f32.vlgmr.msra.gmra.mxu1 %v7197_v3 }
 0x52a   :  { %5532 = vmatpush3.msra.mxu1 %v7080_v44  ;;  %v7215_v45 = vand.u32 4294901760, %v7207_v23  ;;  %v2882_v50 = vsub.f32 %v7203_v8, %v7210_v46 }
 0x52b   :  { %5533 = vmatprep.subr.mxu1 %v7086_v60 }
 0x52c   :  { %5534 = vmatpush3.msra.mxu1 %v7086_v60  ;;  %5547 = vmatprep.mubr.f32.mxu1 %v7215_v45  ;;  %v2872_v2 = vsub.f32 %v7207_v23, %v7215_v45  ;;  %v7229_v36 = vand.u32 4294901760, %v2882_v50  ;;  %v3971_v50 = vld [vmem:[%s7697_s10 + $0x10] sm:$0xff] }
 0x52d   :  { %5535 = vmatprep.subr.mxu1 %v7092_v11 }
 0x52e   :  { %5536 = vmatpush3.msra.mxu1 %v7092_v11  ;;  %v7226_v43 = vand.u32 4294901760, %v2872_v2 }
 0x52f   :  { %5537 = vmatprep.subr.mxu1 %v7098_v42 }
 0x530   :  { %5538 = vmatpush3.msra.mxu1 %v7098_v42  ;;  %5490 = vmatprep.mubr.f32.mxu0 %v7226_v43 }
 0x531   :  { %5539 = vmatprep.subr.mxu1 %v7104_v26  ;;  %5491 = vmatmul.mubr.f32.vlgmr.msra.gmra.mxu0 %v7229_v36 }
 0x532   :  { %5513 = vmatpush3.msra.mxu0 %v7123_v28  ;;  %5540 = vmatpush3.msra.mxu1 %v7104_v26  ;;  %v7252_v28 = vand.u32 4294901760, %v6461_v16 }
 0x533   :  { %5514 = vmatprep.subr.mxu0 %v7129_v39  ;;  %5528 = vmatprep.mubr.f32.mxu0 %v7207_v23 }
 0x534   :  { %5541 = vmatprep.subr.mxu1 %v7110_v24  ;;  %5515 = vmatpush3.msra.mxu0 %v7129_v39  ;;  %v7261_v39 = vand.u32 4294901760, %v6435_v21 }
 0x535   :  { %5542 = vmatpush3.msra.mxu1 %v7110_v24  ;;  %5516 = vmatprep.subr.mxu0 %v7132_v57 }
 0x536   :  { %5543 = vmatprep.subr.mxu1 %v7114_v27  ;;  %5517 = vmatpush3.msra.mxu0 %v7132_v57  ;;  %v7267_v57 = vsub.f32 %v6461_v16, %v7252_v28  ;;  %v7283_v16 = vand.u32 4294901760, %v6437_v48 }
 0x537   :  { %5544 = vmatpush3.msra.mxu1 %v7114_v27  ;;  %5518 = vmatprep.subr.mxu0 %v7138_v58 }
 0x538   :  { %5545 = vmatprep.subr.mxu1 %v7118_v59  ;;  %5519 = vmatpush3.msra.mxu0 %v7138_v58  ;;  %v7280_v58 = vsub.f32 %v6435_v21, %v7261_v39  ;;  %v7297_v21 = vand.u32 4294901760, %v6464_v25 }
 0x539   :  { %5546 = vmatpush3.msra.mxu1 %v7118_v59  ;;  %5520 = vmatprep.subr.mxu0 %v7146_v0 }
 0x53a   :  { %5548 = vmatmul.mubr.f32.vlgmr.msra.gmra.mxu1 %v7210_v46  ;;  %5569 = vmatprep.subr.mxu1 %v7080_v44 }
 0x53b   :  { %5521 = vmatpush3.msra.mxu0 %v7146_v0  ;;  %5570 = vmatpush3.msra.mxu1 %v7080_v44  ;;  %v7272_v44 = vand.u32 4294901760, %v6457_v5  ;;  %v7313_v0 = vand.u32 4294901760, %v6439_v41 }
 0x53c   :  { %5585 = vmatprep.mubr.f32.mxu1 %v7200_v40  ;;  %5522 = vmatprep.subr.mxu0 %v7154_v33 }
 0x53d   :  { %5571 = vmatprep.subr.mxu1 %v7086_v60  ;;  %5523 = vmatpush3.msra.mxu0 %v7154_v33  ;;  %v7329_v33 = vand.u32 4294901760, %v6478_v47 }
 0x53e   :  { %5572 = vmatpush3.msra.mxu1 %v7086_v60  ;;  %5524 = vmatprep.subr.mxu0 %v7162_v51  ;;  %v7290_v60 = vand.u32 4294901760, %v7267_v57 }
 0x53f   :  { %5573 = vmatprep.subr.mxu1 %v7092_v11  ;;  %5525 = vmatpush3.msra.mxu0 %v7162_v51  ;;  %v7345_v51 = vand.u32 4294901760, %v6441_v29 }
 0x540   :  { %5574 = vmatpush3.msra.mxu1 %v7092_v11  ;;  %5526 = vmatprep.subr.mxu0 %v7170_v18  ;;  %v7294_v11 = vsub.f32 %v6457_v5, %v7272_v44  ;;  %v7310_v5 = vand.u32 4294901760, %v7280_v58 }
 0x541   :  { %5575 = vmatprep.subr.mxu1 %v7098_v42  ;;  %5527 = vmatpush3.msra.mxu0 %v7170_v18  ;;  %v7366_v61 = vsub.f32 %v6441_v29, %v7345_v51 }
 0x542   :  { %5576 = vmatpush3.msra.mxu1 %v7098_v42  ;;  %5529 = vmatmul.mubr.f32.vlgmr.msra.gmra.mxu0 %v7203_v8  ;;  %v7305_v42 = vsub.f32 %v6437_v48, %v7283_v16  ;;  %v7321_v48 = vsub.f32 %v6464_v25, %v7297_v21  ;;  %v3505_v25 = vsub.f32 %v7280_v58, %v7310_v5 }
 0x543   :  { %5550 = vmatprep.subr.mxu0 %v7135_v7  ;;  %5577 = vmatprep.subr.mxu1 %v7104_v26  ;;  %v7385_v32 = vand.u32 4294901760, %v7366_v61 }
 0x544   :  { %5551 = vmatpush3.msra.mxu0 %v7135_v7  ;;  %5566 = vmatprep.mubr.f32.mxu0 %v7200_v40  ;;  %v3498_v7 = vsub.f32 %v7267_v57, %v7290_v60  ;;  %v7354_v18 = vand.u32 4294901760, %v7321_v48 }
 0x545   :  { %5578 = vmatpush3.msra.mxu1 %v7104_v26  ;;  %5552 = vmatprep.subr.mxu0 %v7143_v38  ;;  %v7326_v26 = vand.u32 4294901760, %v7294_v11  ;;  %v3547_v6 = vsub.f32 %v7366_v61, %v7385_v32 }
 0x546   :  { %5579 = vmatprep.subr.mxu1 %v7110_v24  ;;  %5553 = vmatpush3.msra.mxu0 %v7143_v38  ;;  %v7342_v38 = vsub.f32 %v6439_v41, %v7313_v0  ;;  %v7358_v41 = vsub.f32 %v6478_v47, %v7329_v33  ;;  %v3526_v19 = vsub.f32 %v7321_v48, %v7354_v18 }
 0x547   :  { %5580 = vmatpush3.msra.mxu1 %v7110_v24  ;;  %5554 = vmatprep.subr.mxu0 %v7151_v14  ;;  %v7338_v24 = vand.u32 4294901760, %v7305_v42  ;;  %v3548_v53 = vand.u32 4294901760, %v3547_v6 }
 0x548   :  { %5581 = vmatprep.subr.mxu1 %v7114_v27  ;;  %5555 = vmatpush3.msra.mxu0 %v7151_v14  ;;  %v3512_v14 = vsub.f32 %v7294_v11, %v7326_v26  ;;  %v7371_v47 = vand.u32 4294901760, %v7342_v38  ;;  %v7378_v29 = vand.u32 4294901760, %v7358_v41  ;;  %v3527_v62 = vand.u32 4294901760, %v3526_v19 }
 0x549   :  { %5582 = vmatpush3.msra.mxu1 %v7114_v27  ;;  %5556 = vmatprep.subr.mxu0 %v7159_v63  ;;  %v3499_v27 = vand.u32 4294901760, %v3498_v7 }
 0x54a   :  { %5583 = vmatprep.subr.mxu1 %v7118_v59  ;;  %5557 = vmatpush3.msra.mxu0 %v7159_v63  ;;  %v3506_v63 = vand.u32 4294901760, %v3505_v25 }
 0x54b   :  { %5584 = vmatpush3.msra.mxu1 %v7118_v59  ;;  %5558 = vmatprep.subr.mxu0 %v7167_v1  ;;  %v3519_v59 = vsub.f32 %v7305_v42, %v7338_v24 }
 0x54c   :  { %5586 = vmatmul.mubr.f32.vlgmr.msra.gmra.mxu1 %v7197_v3  ;;  %5607 = vmatprep.subr.mxu1 %v3499_v27 }
 0x54d   :  { %5559 = vmatpush3.msra.mxu0 %v7167_v1  ;;  %5608 = vmatpush3.msra.mxu1 %v3499_v27  ;;  %v3513_v1 = vand.u32 4294901760, %v3512_v14  ;;  %v3520_v20 = vand.u32 4294901760, %v3519_v59  ;;  %v5397_v59 = vpop.f32.mrf.mxu1 }
 0x54e   :  { %5623 = vmatprep.mubr.f32.mxu1 %v7200_v40  ;;  %5560 = vmatprep.subr.mxu0 %v7175_v31 }
 0x54f   :  { %5609 = vmatprep.subr.mxu1 %v3506_v63  ;;  %5561 = vmatpush3.msra.mxu0 %v7175_v31  ;;  %v3533_v31 = vsub.f32 %v7342_v38, %v7371_v47 }
 0x550   :  { %5610 = vmatpush3.msra.mxu1 %v3506_v63  ;;  %5562 = vmatprep.subr.mxu0 %v7180_v30  ;;  %v5378_v63 = vpop.f32.mrf.mxu0 }
 0x551   :  { %5611 = vmatprep.subr.mxu1 %v3513_v1  ;;  %5563 = vmatpush3.msra.mxu0 %v7180_v30  ;;  %v3540_v30 = vsub.f32 %v7358_v41, %v7378_v29  ;;  %v3534_v34 = vand.u32 4294901760, %v3533_v31 }
 0x552   :  { %5612 = vmatpush3.msra.mxu1 %v3513_v1  ;;  %5564 = vmatprep.subr.mxu0 %v7185_v54 }
 0x553   :  { %5613 = vmatprep.subr.mxu1 %v3520_v20  ;;  %5565 = vmatpush3.msra.mxu0 %v7185_v54  ;;  %v3541_v54 = vand.u32 4294901760, %v3540_v30 }
 0x554   :  { %5614 = vmatpush3.msra.mxu1 %v3520_v20  ;;  %5567 = vmatmul.mubr.f32.vlgmr.msra.gmra.mxu0 %v7197_v3  ;;  %v2405_v20 = vadd.f32 %v5397_v59, %v5378_v63 }
 0x555   :  { %5588 = vmatprep.subr.mxu0 %v7252_v28  ;;  %5615 = vmatprep.subr.mxu1 %v3527_v62 }
 0x556   :  { %5589 = vmatpush3.msra.mxu0 %v7252_v28  ;;  %5604 = vmatprep.mubr.f32.mxu0 %v7226_v43 }
 0x557   :  { %5616 = vmatpush3.msra.mxu1 %v3527_v62  ;;  %5590 = vmatprep.subr.mxu0 %v7261_v39 }
 0x558   :  { %5617 = vmatprep.subr.mxu1 %v3534_v34  ;;  %5591 = vmatpush3.msra.mxu0 %v7261_v39 }
 0x559   :  { %5618 = vmatpush3.msra.mxu1 %v3534_v34  ;;  %5592 = vmatprep.subr.mxu0 %v7272_v44 }
 0x55a   :  { %5619 = vmatprep.subr.mxu1 %v3541_v54  ;;  %5593 = vmatpush3.msra.mxu0 %v7272_v44 }
 0x55b   :  { %5620 = vmatpush3.msra.mxu1 %v3541_v54  ;;  %5594 = vmatprep.subr.mxu0 %v7283_v16 }
 0x55c   :  { %5621 = vmatprep.subr.mxu1 %v3548_v53  ;;  %5595 = vmatpush3.msra.mxu0 %v7283_v16 }
 0x55d   :  { %5622 = vmatpush3.msra.mxu1 %v3548_v53  ;;  %5596 = vmatprep.subr.mxu0 %v7297_v21 }
 0x55e   :  { %5624 = vmatmul.mubr.f32.vlgmr.msra.gmra.mxu1 %v7197_v3  ;;  %5645 = vmatprep.subr.mxu1 %v7252_v28 }
 0x55f   :  { %5597 = vmatpush3.msra.mxu0 %v7297_v21  ;;  %5646 = vmatpush3.msra.mxu1 %v7252_v28 }
 0x560   :  { %5661 = vmatprep.mubr.f32.mxu1 %v7215_v45  ;;  %5598 = vmatprep.subr.mxu0 %v7313_v0  ;;  %v7539_v45 = vand.u32 4294901760, %v3972_v12 }
 0x561   :  { %5647 = vmatprep.subr.mxu1 %v7261_v39  ;;  %5599 = vmatpush3.msra.mxu0 %v7313_v0 }
 0x562   :  { %5648 = vmatpush3.msra.mxu1 %v7261_v39  ;;  %5600 = vmatprep.subr.mxu0 %v7329_v33 }
 0x563   :  { %5649 = vmatprep.subr.mxu1 %v7272_v44  ;;  %5601 = vmatpush3.msra.mxu0 %v7329_v33 }
 0x564   :  { %5650 = vmatpush3.msra.mxu1 %v7272_v44  ;;  %5602 = vmatprep.subr.mxu0 %v7345_v51 }
 0x565   :  { %5651 = vmatprep.subr.mxu1 %v7283_v16  ;;  %5603 = vmatpush3.msra.mxu0 %v7345_v51 }
 0x566   :  { %5652 = vmatpush3.msra.mxu1 %v7283_v16  ;;  %5605 = vmatmul.mubr.f32.vlgmr.msra.gmra.mxu0 %v7229_v36 }
 0x567   :  { %5626 = vmatprep.subr.mxu0 %v7267_v57  ;;  %5653 = vmatprep.subr.mxu1 %v7297_v21 }
 0x568   :  { %5627 = vmatpush3.msra.mxu0 %v7267_v57  ;;  %5642 = vmatprep.mubr.f32.mxu0 %v7207_v23  ;;  %v7533_v23 = vand.u32 4294901760, %v7521_v55  ;;  %v3970_v57 = vld [vmem:[%s7697_s10 + $0x8] sm:$0xff] }
 0x569   :  { %5654 = vmatpush3.msra.mxu1 %v7297_v21  ;;  %5628 = vmatprep.subr.mxu0 %v7280_v58 }
 0x56a   :  { %5655 = vmatprep.subr.mxu1 %v7313_v0  ;;  %5629 = vmatpush3.msra.mxu0 %v7280_v58  ;;  %v4110_v43 = vsub.f32 %v7521_v55, %v7533_v23 }
 0x56b   :  { %5656 = vmatpush3.msra.mxu1 %v7313_v0  ;;  %5630 = vmatprep.subr.mxu0 %v7294_v11 }
 0x56c   :  { %5657 = vmatprep.subr.mxu1 %v7329_v33  ;;  %5631 = vmatpush3.msra.mxu0 %v7294_v11 }
 0x56d   :  { %5658 = vmatpush3.msra.mxu1 %v7329_v33  ;;  %5632 = vmatprep.subr.mxu0 %v7305_v42 }
 0x56e   :  { %5659 = vmatprep.subr.mxu1 %v7345_v51  ;;  %5633 = vmatpush3.msra.mxu0 %v7305_v42 }
 0x56f   :  { %5660 = vmatpush3.msra.mxu1 %v7345_v51  ;;  %5634 = vmatprep.subr.mxu0 %v7321_v48 }
 0x570   :  { %5662 = vmatmul.mubr.f32.vlgmr.msra.gmra.mxu1 %v7210_v46  ;;  %5683 = vmatprep.subr.mxu1 %v7252_v28 }
 0x571   :  { %5635 = vmatpush3.msra.mxu0 %v7321_v48  ;;  %5684 = vmatpush3.msra.mxu1 %v7252_v28  ;;  %v7550_v28 = vand.u32 4294901760, %v3971_v50 }
 0x572   :  { %5699 = vmatprep.mubr.f32.mxu1 %v7200_v40  ;;  %5636 = vmatprep.subr.mxu0 %v7342_v38 }
 0x573   :  { %5685 = vmatprep.subr.mxu1 %v7261_v39  ;;  %5637 = vmatpush3.msra.mxu0 %v7342_v38 }
 0x574   :  { %5686 = vmatpush3.msra.mxu1 %v7261_v39  ;;  %5638 = vmatprep.subr.mxu0 %v7358_v41  ;;  %v7553_v39 = vsub.f32 %v3972_v12, %v7539_v45 }
 0x575   :  { %5687 = vmatprep.subr.mxu1 %v7272_v44  ;;  %5639 = vmatpush3.msra.mxu0 %v7358_v41 }
 0x576   :  { %5688 = vmatpush3.msra.mxu1 %v7272_v44  ;;  %5640 = vmatprep.subr.mxu0 %v7366_v61  ;;  %v4111_v44 = vand.u32 4294901760, %v4110_v43  ;;  %v7568_v11 = vand.u32 4294901760, %v7553_v39 }
 0x577   :  { %5689 = vmatprep.subr.mxu1 %v7283_v16  ;;  %5641 = vmatpush3.msra.mxu0 %v7366_v61  ;;  %v2277_v61 = vpop.f32.mrf.mxu0 }
 0x578   :  { %5690 = vmatpush3.msra.mxu1 %v7283_v16  ;;  %5643 = vmatmul.mubr.f32.vlgmr.msra.gmra.mxu0 %v7203_v8  ;;  %v4103_v8 = vsub.f32 %v7506_v52, %v7518_v37  ;;  %v7562_v16 = vsub.f32 %v3971_v50, %v7550_v28  ;;  %v4124_v48 = vsub.f32 %v7553_v39, %v7568_v11 }
 0x579   :  { %5664 = vmatprep.subr.mxu0 %v7290_v60  ;;  %5691 = vmatprep.subr.mxu1 %v7297_v21  ;;  %v5416_v1 = vpop.f32.mrf.mxu0 }
 0x57a   :  { %5665 = vmatpush3.msra.mxu0 %v7290_v60  ;;  %5680 = vmatprep.mubr.f32.mxu0 %v7200_v40  ;;  %v4097_v40 = vand.u32 4294901760, %v4096_v49  ;;  %v4104_v2 = vand.u32 4294901760, %v4103_v8  ;;  %v7564_v60 = vand.u32 4294901760, %v3970_v57  ;;  %v2500_v30 = vadd.f32 %v5416_v1, %v2405_v20 }
 0x57b   :  { %5692 = vmatpush3.msra.mxu1 %v7297_v21  ;;  %5666 = vmatprep.subr.mxu0 %v7310_v5  ;;  %v3969_v21 = vld [vmem:[%s7697_s10] sm:$0xff] }
 0x57c   :  { %5693 = vmatprep.subr.mxu1 %v7313_v0  ;;  %5667 = vmatpush3.msra.mxu0 %v7310_v5  ;;  %v7575_v5 = vand.u32 4294901760, %v7562_v16  ;;  %v7580_v7 = vand.u32 4294901760, %v3969_v21 }
 0x57d   :  { %5694 = vmatpush3.msra.mxu1 %v7313_v0  ;;  %5668 = vmatprep.subr.mxu0 %v7326_v26  ;;  %v7578_v0 = vsub.f32 %v3970_v57, %v7564_v60 }
 0x57e   :  { %5695 = vmatprep.subr.mxu1 %v7329_v33  ;;  %5669 = vmatpush3.msra.mxu0 %v7326_v26  ;;  %v4131_v26 = vsub.f32 %v7562_v16, %v7575_v5  ;;  %v7592_v25 = vsub.f32 %v3969_v21, %v7580_v7 }
 0x57f   :  { %5696 = vmatpush3.msra.mxu1 %v7329_v33  ;;  %5670 = vmatprep.subr.mxu0 %v7338_v24  ;;  %v7589_v33 = vand.u32 4294901760, %v7578_v0 }
 0x580   :  { %5697 = vmatprep.subr.mxu1 %v7345_v51  ;;  %5671 = vmatpush3.msra.mxu0 %v7338_v24  ;;  %v4125_v24 = vand.u32 4294901760, %v4124_v48  ;;  %v4132_v38 = vand.u32 4294901760, %v4131_v26  ;;  %v7599_v27 = vand.u32 4294901760, %v7592_v25 }
 0x581   :  { %5698 = vmatpush3.msra.mxu1 %v7345_v51  ;;  %5672 = vmatprep.subr.mxu0 %v7354_v18  ;;  %v4138_v51 = vsub.f32 %v7578_v0, %v7589_v33 }
 0x582   :  { %5700 = vmatmul.mubr.f32.vlgmr.msra.gmra.mxu1 %v7197_v3  ;;  %5673 = vmatpush3.msra.mxu0 %v7354_v18  ;;  %v4145_v18 = vsub.f32 %v7592_v25, %v7599_v27 }
 0x583   :  { %5674 = vmatprep.subr.mxu0 %v7371_v47  ;;  %5721 = vmatprep.subr.mxu1 %v4097_v40  ;;  %v4139_v14 = vand.u32 4294901760, %v4138_v51 }
 0x584   :  { %5675 = vmatpush3.msra.mxu0 %v7371_v47  ;;  %5722 = vmatpush3.msra.mxu1 %v4097_v40  ;;  %v4146_v41 = vand.u32 4294901760, %v4145_v18  ;;  %v2398_v47 = vpop.f32.mrf.mxu1 }
 0x585   :  { %5676 = vmatprep.subr.mxu0 %v7378_v29  ;;  %5723 = vmatprep.subr.mxu1 %v4104_v2  ;;  %v2399_v62 = vadd.f32 %v2398_v47, %v2277_v61 }
 0x586   :  { %5677 = vmatpush3.msra.mxu0 %v7378_v29  ;;  %5724 = vmatpush3.msra.mxu1 %v4104_v2  ;;  %v5435_v19 = vpop.f32.mrf.mxu1  ;;  %v2492_v29 = vpop.f32.mrf.mxu0 }
 0x587   :  { %5678 = vmatprep.subr.mxu0 %v7385_v32  ;;  %5725 = vmatprep.subr.mxu1 %v4111_v44  ;;  %v2493_v6 = vadd.f32 %v2492_v29, %v2399_v62  ;;  %v2589_v54 = vadd.f32 %v5435_v19, %v2500_v30  ;;  %v4585_v29 = vld [vmem:[%s7692_s5] ss:$0 sm:$0xff]  ;;  %s5949_s5 = smov [#allocation8]  }
 0x588   :  { %5679 = vmatpush3.msra.mxu0 %v7385_v32  ;;  %5726 = vmatpush3.msra.mxu1 %v4111_v44  ;;  %v2580_v31 = vpop.f32.mrf.mxu1  ;;  %v5454_v32 = vpop.f32.mrf.mxu0  ;;  %s4570_s1 = sshll.u32 %s5949_s5, 4  ;;  %s4571_s1 = int_to_ptr.vmem [resolvable:$true] %s4570_s1 }
 0x589   :  { %5681 = vmatmul.mubr.f32.vlgmr.msra.gmra.mxu0 %v7197_v3  ;;  %5702 = vmatprep.subr.mxu0 %v7487_v15  ;;  %v7523_v3 = vand.u32 4294901760, %v3973_v35  ;;  %v2581_v13 = vadd.f32 %v2580_v31, %v2493_v6  ;;  %v2690_v4 = vadd.f32 %v5454_v32, %v2589_v54  ;;  %s5915_s6 = scalar_lea.vmem %s4571_s1, 256  ;;  %p5920_p2 = scmp.lt.s32.totalorder %s4571_s1, %s4571_s1 }
 0x58a   :  { %5703 = vmatpush3.msra.mxu0 %v7487_v15  ;;  %v5473_v34 = vpop.f32.mrf.mxu1  ;;  %v2683_v53 = vpop.f32.mrf.mxu0  ;;  %p5916_p1 = scmp.ne.s32.totalorder %s4571_s1, %s5915_s6  ;;  %p5921_p3 = scmp.lt.s32.totalorder %s5915_s6, %s5915_s6 }
 0x58b   :  { %5704 = vmatprep.subr.mxu0 %v7495_v9  ;;  %v7536_v46 = vsub.f32 %v3973_v35, %v7523_v3  ;;  %v2684_v35 = vadd.f32 %v2683_v53, %v2581_v13  ;;  %v2775_v49 = vadd.f32 %v5473_v34, %v2690_v4 }
 0x58c   :  { %5705 = vmatpush3.msra.mxu0 %v7495_v9  ;;  %v2768_v17 = vpop.f32.mrf.mxu1  ;;  %p5922_p4 = por %p5921_p3, %p5920_p2 }
 0x58d   :  { %5706 = vmatprep.subr.mxu0 %v7508_v22  ;;  %v7548_v36 = vand.u32 4294901760, %v7536_v46  ;;  %v2769_v12 = vadd.f32 %v2768_v17, %v2684_v35  ;;  %v2788_v40 = vmul.f32 1.442695, %v2775_v49 }
 0x58e   :  { %5707 = vmatpush3.msra.mxu0 %v7508_v22  ;;  %p5923_p5 = pnand %p5922_p4, %p5916_p1 }
 0x58f   :  { %5708 = vmatprep.subr.mxu0 %v7523_v3  ;;  %v4117_v58 = vsub.f32 %v7536_v46, %v7548_v36  ;;  %v2786_v8 = vmul.f32 1.442695, %v2769_v12  ;;  %5839 = vpow2.f32 %v2788_v40 }
 0x590   :  { %5709 = vmatpush3.msra.mxu0 %v7523_v3 }
 0x591   :  { %5710 = vmatprep.subr.mxu0 %v7539_v45  ;;  %v4118_v42 = vand.u32 4294901760, %v4117_v58  ;;  %5841 = vpow2.f32 %v2786_v8 }
 0x592   :  { %5711 = vmatpush3.msra.mxu0 %v7539_v45 }
 0x593   :  { %5712 = vmatprep.subr.mxu0 %v7550_v28  ;;  %5727 = vmatprep.subr.mxu1 %v4118_v42 }
 0x594   :  { %5713 = vmatpush3.msra.mxu0 %v7550_v28  ;;  %5728 = vmatpush3.msra.mxu1 %v4118_v42 }
 0x595   :  { %5714 = vmatprep.subr.mxu0 %v7564_v60  ;;  %5729 = vmatprep.subr.mxu1 %v4125_v24 }
 0x596   :  { %5715 = vmatpush3.msra.mxu0 %v7564_v60  ;;  %5730 = vmatpush3.msra.mxu1 %v4125_v24 }
 0x597   :  { %5716 = vmatprep.subr.mxu0 %v7580_v7  ;;  %5731 = vmatprep.subr.mxu1 %v4132_v38 }
 0x598   :  { %5717 = vmatpush3.msra.mxu0 %v7580_v7  ;;  %5732 = vmatpush3.msra.mxu1 %v4132_v38 }
 0x599   :  { %5740 = vmatprep.subr.mxu0 %v7493_v10  ;;  %5733 = vmatprep.subr.mxu1 %v4139_v14 }
 0x59a   :  { %5734 = vmatpush3.msra.mxu1 %v4139_v14 }
 0x59b   :  { %5735 = vmatprep.subr.mxu1 %v4146_v41 }
 0x59c   :  { %5736 = vmatpush3.msra.mxu1 %v4146_v41  ;;  %v5840_v2 = vpop.eup %5839 }
 0x59d   :  { %5759 = vmatprep.subr.mxu1 %v7487_v15  ;;  %v3384_v30 = vmul.f32 %v5840_v2, %v4585_v29 }
 0x59e   :  { %v5842_v58 = vpop.eup %5841 }
 0x59f   :  { %v3383_v13 = vmul.f32 %v5842_v58, %v4585_v29 }
 0x5e9   :  { %v5511_v43 = vpop.f32.mrf.mxu1 }
 0x5eb   :  { %v2996_v48 = vpop.f32.mrf.mxu1 }
 0x5f1   :  { %v5492_v50 = vpop.f32.mrf.mxu0 }
 0x5f2   :  { %v2886_v44 = vadd.f32 %v5840_v2, %v5492_v50 }
 0x5f3   :  { %v2875_v57 = vpop.f32.mrf.mxu0 }
 0x5f4   :  { %v2876_v42 = vadd.f32 %v5842_v58, %v2875_v57  ;;  %v3003_v26 = vadd.f32 %v5511_v43, %v2886_v44 }
 0x5f6   :  { %v2997_v14 = vadd.f32 %v2996_v48, %v2876_v42 }
 0x5fa   :  { %v5549_v24 = vpop.f32.mrf.mxu1 }
 0x5fc   :  { %v3178_v63 = vpop.f32.mrf.mxu1 }
 0x602   :  { %v5530_v21 = vpop.f32.mrf.mxu0 }
 0x603   :  { %v3098_v51 = vadd.f32 %v5530_v21, %v3003_v26 }
 0x604   :  { %v3090_v38 = vpop.f32.mrf.mxu0 }
 0x605   :  { %v3091_v41 = vadd.f32 %v3090_v38, %v2997_v14  ;;  %v3187_v59 = vadd.f32 %v5549_v24, %v3098_v51 }
 0x607   :  { %v3179_v19 = vadd.f32 %v3178_v63, %v3091_v41 }
 0x60c   :  { %v5587_v61 = vpop.f32.mrf.mxu1 }
 0x60e   :  { %v3366_v32 = vpop.f32.mrf.mxu1 }
 0x614   :  { %v5568_v18 = vpop.f32.mrf.mxu0 }
 0x615   :  { %v3288_v1 = vadd.f32 %v5568_v18, %v3187_v59 }
 0x616   :  { %v3281_v47 = vpop.f32.mrf.mxu0 }
 0x617   :  { %v3282_v31 = vadd.f32 %v3281_v47, %v3179_v19  ;;  %v3373_v62 = vadd.f32 %v5587_v61, %v3288_v1 }
 0x619   :  { %v3367_v54 = vadd.f32 %v3366_v32, %v3282_v31  ;;  %5843 = vrcp.f32 %v3373_v62 }
 0x61b   :  { %5845 = vrcp.f32 %v3367_v54 }
 0x61e   :  { %v5625_v34 = vpop.f32.mrf.mxu1 }
 0x620   :  { %v3585_v35 = vpop.f32.mrf.mxu1 }
 0x626   :  { %v5606_v20 = vpop.f32.mrf.mxu0  ;;  %v5844_v38 = vpop.eup %5843 }
 0x627   :  { %v3475_v53 = vadd.f32 %v5606_v20, %v3384_v30 }
 0x628   :  { %v3464_v6 = vpop.f32.mrf.mxu0  ;;  %v5846_v41 = vpop.eup %5845 }
 0x629   :  { %v3465_v17 = vadd.f32 %v3464_v6, %v3383_v13  ;;  %v3592_v49 = vadd.f32 %v5625_v34, %v3475_v53 }
 0x62b   :  { %v3586_v50 = vadd.f32 %v3585_v35, %v3465_v17 }
 0x630   :  { %v5663_v12 = vpop.f32.mrf.mxu1 }
 0x632   :  { %v3767_v57 = vpop.f32.mrf.mxu1 }
 0x638   :  { %v5644_v4 = vpop.f32.mrf.mxu0 }
 0x639   :  { %v3687_v8 = vadd.f32 %v5644_v4, %v3592_v49 }
 0x63a   :  { %v3679_v40 = vpop.f32.mrf.mxu0 }
 0x63b   :  { %v3680_v43 = vadd.f32 %v3679_v40, %v3586_v50  ;;  %v3776_v44 = vadd.f32 %v5663_v12, %v3687_v8 }
 0x63d   :  { %v3768_v48 = vadd.f32 %v3767_v57, %v3680_v43 }
 0x642   :  { %v5701_v21 = vpop.f32.mrf.mxu1 }
 0x644   :  { %v3955_v51 = vpop.f32.mrf.mxu1 }
 0x649   :  { %v5682_v2 = vpop.f32.mrf.mxu0 }
 0x64a   :  { %v3877_v42 = vadd.f32 %v5682_v2, %v3776_v44 }
 0x64b   :  { %v3870_v26 = vpop.f32.mrf.mxu0 }
 0x64c   :  { %v3962_v24 = vadd.f32 %v5701_v21, %v3877_v42  ;;  %v3871_v58 = vadd.f32 %v3870_v26, %v3768_v48 }
 0x64e   :  { %v3968_v14 = vmul.f32 %v5844_v38, %v3962_v24  ;;  %v3956_v18 = vadd.f32 %v3955_v51, %v3871_v58 }
 0x650   :  { %v3981_v63 = vsel %vm1571_vm2, %v3968_v14, 0  ;;  %v3966_v59 = vmul.f32 %v5846_v41, %v3956_v18 }
 0x651   :  { %v7610_v61 = vand.u32 4294901760, %v3981_v63 }
 0x652   :  { %v3978_v47 = vsel %vm1571_vm2, %v3966_v59, 0 }
 0x653   :  { %v4067_v1 = vsub.f32 %v3981_v63, %v7610_v61  ;;  %v4056_v19 = vand.u32 4294901760, %v3978_v47 }
 0x655   :  { %v4057_v29 = vsub.f32 %v3978_v47, %v4056_v19  ;;  %5737 = vmatprep.mubr.f32.mxu1 %v4056_v19  ;;  %v4068_v20 = vand.u32 4294901760, %v4067_v1 }
 0x656   :  { %5738 = vmatmul.mubr.f32.vlgmr.msra.gmra.mxu1 %v7610_v61 }
 0x657   :  { %5760 = vmatpush3.msra.mxu1 %v7487_v15  ;;  %v4058_v31 = vand.u32 4294901760, %v4057_v29  ;;  %v4069_v32 = vsub.f32 %v4067_v1, %v4068_v20 }
 0x658   :  { %5761 = vmatprep.subr.mxu1 %v7495_v9 }
 0x659   :  { %5762 = vmatpush3.msra.mxu1 %v7495_v9  ;;  %5775 = vmatprep.mubr.f32.mxu1 %v4058_v31  ;;  %v4059_v62 = vsub.f32 %v4057_v29, %v4058_v31  ;;  %v4070_v34 = vand.u32 4294901760, %v4069_v32 }
 0x65a   :  { %5763 = vmatprep.subr.mxu1 %v7508_v22 }
 0x65b   :  { %5764 = vmatpush3.msra.mxu1 %v7508_v22  ;;  %v4060_v30 = vand.u32 4294901760, %v4059_v62 }
 0x65c   :  { %5765 = vmatprep.subr.mxu1 %v7523_v3 }
 0x65d   :  { %5766 = vmatpush3.msra.mxu1 %v7523_v3  ;;  %5718 = vmatprep.mubr.f32.mxu0 %v4060_v30 }
 0x65e   :  { %5767 = vmatprep.subr.mxu1 %v7539_v45  ;;  %5719 = vmatmul.mubr.f32.vlgmr.msra.gmra.mxu0 %v4070_v34 }
 0x65f   :  { %5741 = vmatpush3.msra.mxu0 %v7493_v10  ;;  %5768 = vmatpush3.msra.mxu1 %v7539_v45 }
 0x660   :  { %5742 = vmatprep.subr.mxu0 %v7506_v52  ;;  %5756 = vmatprep.mubr.f32.mxu0 %v4057_v29 }
 0x661   :  { %5769 = vmatprep.subr.mxu1 %v7550_v28  ;;  %5743 = vmatpush3.msra.mxu0 %v7506_v52 }
 0x662   :  { %5770 = vmatpush3.msra.mxu1 %v7550_v28  ;;  %5744 = vmatprep.subr.mxu0 %v7521_v55 }
 0x663   :  { %5771 = vmatprep.subr.mxu1 %v7564_v60  ;;  %5745 = vmatpush3.msra.mxu0 %v7521_v55 }
 0x664   :  { %5772 = vmatpush3.msra.mxu1 %v7564_v60  ;;  %5746 = vmatprep.subr.mxu0 %v7536_v46 }
 0x665   :  { %5773 = vmatprep.subr.mxu1 %v7580_v7  ;;  %5747 = vmatpush3.msra.mxu0 %v7536_v46 }
 0x666   :  { %5774 = vmatpush3.msra.mxu1 %v7580_v7  ;;  %5748 = vmatprep.subr.mxu0 %v7553_v39 }
 0x667   :  { %5776 = vmatmul.mubr.f32.vlgmr.msra.gmra.mxu1 %v4068_v20  ;;  %5797 = vmatprep.subr.mxu1 %v7487_v15 }
 0x668   :  { %5749 = vmatpush3.msra.mxu0 %v7553_v39  ;;  %5798 = vmatpush3.msra.mxu1 %v7487_v15 }
 0x669   :  { %5813 = vmatprep.mubr.f32.mxu1 %v4056_v19  ;;  %5750 = vmatprep.subr.mxu0 %v7562_v16 }
 0x66a   :  { %5799 = vmatprep.subr.mxu1 %v7495_v9  ;;  %5751 = vmatpush3.msra.mxu0 %v7562_v16 }
 0x66b   :  { %5800 = vmatpush3.msra.mxu1 %v7495_v9  ;;  %5752 = vmatprep.subr.mxu0 %v7578_v0 }
 0x66c   :  { %5801 = vmatprep.subr.mxu1 %v7508_v22  ;;  %5753 = vmatpush3.msra.mxu0 %v7578_v0 }
 0x66d   :  { %5802 = vmatpush3.msra.mxu1 %v7508_v22  ;;  %5754 = vmatprep.subr.mxu0 %v7592_v25 }
 0x66e   :  { %5803 = vmatprep.subr.mxu1 %v7523_v3  ;;  %5755 = vmatpush3.msra.mxu0 %v7592_v25 }
 0x66f   :  { %5804 = vmatpush3.msra.mxu1 %v7523_v3  ;;  %5757 = vmatmul.mubr.f32.vlgmr.msra.gmra.mxu0 %v4067_v1 }
 0x670   :  { %5778 = vmatprep.subr.mxu0 %v7503_v56  ;;  %5805 = vmatprep.subr.mxu1 %v7539_v45 }
 0x671   :  { %5779 = vmatpush3.msra.mxu0 %v7503_v56  ;;  %5794 = vmatprep.mubr.f32.mxu0 %v4056_v19 }
 0x672   :  { %5806 = vmatpush3.msra.mxu1 %v7539_v45  ;;  %5780 = vmatprep.subr.mxu0 %v7518_v37 }
 0x673   :  { %5807 = vmatprep.subr.mxu1 %v7550_v28  ;;  %5781 = vmatpush3.msra.mxu0 %v7518_v37 }
 0x674   :  { %5808 = vmatpush3.msra.mxu1 %v7550_v28  ;;  %5782 = vmatprep.subr.mxu0 %v7533_v23 }
 0x675   :  { %5809 = vmatprep.subr.mxu1 %v7564_v60  ;;  %5783 = vmatpush3.msra.mxu0 %v7533_v23 }
 0x676   :  { %5810 = vmatpush3.msra.mxu1 %v7564_v60  ;;  %5784 = vmatprep.subr.mxu0 %v7548_v36 }
 0x677   :  { %5811 = vmatprep.subr.mxu1 %v7580_v7  ;;  %5785 = vmatpush3.msra.mxu0 %v7548_v36 }
 0x678   :  { %5812 = vmatpush3.msra.mxu1 %v7580_v7  ;;  %5786 = vmatprep.subr.mxu0 %v7568_v11 }
 0x679   :  { %5814 = vmatmul.mubr.f32.vlgmr.msra.gmra.mxu1 %v7610_v61  ;;  %5787 = vmatpush3.msra.mxu0 %v7568_v11 }
 0x67a   :  { %5788 = vmatprep.subr.mxu0 %v7575_v5 }
 0x67b   :  { %5789 = vmatpush3.msra.mxu0 %v7575_v5 }
 0x67c   :  { %5790 = vmatprep.subr.mxu0 %v7589_v33 }
 0x67d   :  { %5791 = vmatpush3.msra.mxu0 %v7589_v33 }
 0x67e   :  { %5792 = vmatprep.subr.mxu0 %v7599_v27 }
 0x67f   :  { %5793 = vmatpush3.msra.mxu0 %v7599_v27 }
 0x680   :  { %5795 = vmatmul.mubr.f32.vlgmr.msra.gmra.mxu0 %v7610_v61 }
 0x716   :  { %v5739_v10 = vpop.f32.mrf.mxu1 }
 0x718   :  { %v4183_v52 = vpop.f32.mrf.mxu1 }
 0x71e   :  { %v5720_v15 = vpop.f32.mrf.mxu0 }
 0x71f   :  { %v4190_v22 = vadd.f32 %v5739_v10, %v5720_v15 }
 0x720   :  { %v4062_v9 = vpop.f32.mrf.mxu0 }
 0x721   :  { %v4184_v3 = vadd.f32 %v4183_v52, %v4062_v9 }
 0x727   :  { %v5777_v37 = vpop.f32.mrf.mxu1 }
 0x729   :  { %v4365_v45 = vpop.f32.mrf.mxu1 }
 0x72f   :  { %v5758_v56 = vpop.f32.mrf.mxu0 }
 0x730   :  { %v4285_v23 = vadd.f32 %v5758_v56, %v4190_v22 }
 0x731   :  { %v4277_v55 = vpop.f32.mrf.mxu0 }
 0x732   :  { %v4278_v46 = vadd.f32 %v4277_v55, %v4184_v3  ;;  %v4374_v36 = vadd.f32 %v5777_v37, %v4285_v23 }
 0x734   :  { %v4366_v60 = vadd.f32 %v4365_v45, %v4278_v46 }
 0x739   :  { %v5815_v28 = vpop.f32.mrf.mxu1 }
 0x73b   :  { %v4553_v7 = vpop.f32.mrf.mxu1 }
 0x740   :  { %v5796_v39 = vpop.f32.mrf.mxu0 }
 0x741   :  { %v4475_v16 = vadd.f32 %v5796_v39, %v4374_v36 }
 0x742   :  { %v4468_v11 = vpop.f32.mrf.mxu0 }
 0x743   :  { %v4560_v5 = vadd.f32 %v5815_v28, %v4475_v16  ;;  %v4469_v0 = vadd.f32 %v4468_v11, %v4366_v60 }
 0x745   :  { %4564 = vst.msk [vmem:[#allocation8 + $0x8] sm:$0xff] %vm82_vm0, %v4560_v5  ;;  %v4554_v33 = vadd.f32 %v4553_v7, %v4469_v0 }
 0x747   :  { %4563 = vst.msk [vmem:[#allocation8] sm:$0xff] %vm82_vm0, %v4554_v33 }
 0x748   :  { %5926 = shalt.err (!%p5923_p5)
}
 0x749   :  { %4576 = dma.vmem_to_hbm [thread:$0]  %s4571_s1, 256, %s7698_s11, [#allocation4], %s5943_s22, %s5943_s22, %s5944_s23  }
 0x74a   :  { %5939 = dma.done.wait [#allocation4], 256  }
 0x74b   :  { %5940 = vsyncadd [#allocation4], 4294967040 }
 0x74c   :  { %4580 = vsyncpa [#allocation3], 1 }
 0x74d   :  { %4581 = vsyncpa [#allocation6], 1 }
 0x74e   :  { %4582 = vsyncpa [#allocation4], 1 }

</bundles_post_ra>
